<compile_context>
chip_gen: v7x
topology: tpu7x:2x2x1
jax: 0.10.0
libtpu: 0.0.40
codegen_flags: <defaults>
</compile_context>

<pallas_src>
import functools

import jax
import jax.numpy as jnp
import numpy as np
from jax.experimental import pallas as pl
from jax.experimental.pallas import tpu as pltpu

BN_EPS = 1e-5


def _round_up(a, m):
    return ((a + m - 1) // m) * m


def _encoder_kernel(n_real, gather_dtype,
                    x_hbm, gidx_ref, dstc_ref, batch_ref, ea_ref,
                    wd_ref, ws_ref, we_ref, b_ref, gamma_ref, beta_ref,
                    out_ref, x_scr, agg_scr):
    l = pl.program_id(0)            # layer index (outer, carried)
    e = pl.program_id(1)            # edge-chunk index (inner, reduction)
    n_layers = pl.num_programs(0)
    n_chunks = pl.num_programs(1)

    FP, N = x_scr.shape             # padded feature rows (sublanes), padded nodes (lanes)
    TE = dstc_ref.shape[0]          # edge-chunk size (multiple of 128)
    TE2 = gidx_ref.shape[1]         # 2 * TE  (merged dst|src gather row)

    one_g = jnp.ones((), gather_dtype)
    zero_g = jnp.zeros((), gather_dtype)

    @pl.when(jnp.logical_and(l == 0, e == 0))
    def _init():
        pltpu.sync_copy(x_hbm, x_scr)           # x stays in HBM; one copy into scratch
        out_ref[...] = jnp.zeros_like(out_ref)

    @pl.when(e == 0)
    def _zero_agg():
        agg_scr[...] = jnp.zeros_like(agg_scr)

    # ---- merged gather:  x_both = x_scr @ onehot([dst | src])  ->  (FP, 2*TE) --------
    node_ids = jax.lax.broadcasted_iota(jnp.int32, (N, TE2), 0)
    g_gather = jnp.where(node_ids == gidx_ref[...], one_g, zero_g)     # (N, 2TE); pad edge=-1 -> 0
    x_g = x_scr[...].astype(gather_dtype)                              # (FP, N)
    x_both = jnp.dot(x_g, g_gather, preferred_element_type=jnp.float32)
    x_dst = x_both[:, :TE]                                             # lane-aligned slices
    x_src = x_both[:, TE:]

    # ---- fused [f|s] message pre-activation: weights consumed whole, K=32/32/D -------
    fs = (jnp.dot(wd_ref[0], x_dst, preferred_element_type=jnp.float32)
          + jnp.dot(ws_ref[0], x_src, preferred_element_type=jnp.float32)
          + jnp.dot(we_ref[0], ea_ref[...], preferred_element_type=jnp.float32)
          + b_ref[0])                                                  # (2*FP, TE)
    msg = jax.nn.sigmoid(fs[:FP]) * jax.nn.softplus(fs[FP:])           # (FP, TE), f32

    # ---- scatter-add: one-hot built directly in (TE, N) orientation ------------------
    lane_ids = jax.lax.broadcasted_iota(jnp.int32, (TE, N), 1)
    g_scatter = jnp.where(lane_ids == dstc_ref[...], one_g, zero_g)    # (TE, N)
    agg_scr[...] += jnp.dot(msg.astype(gather_dtype), g_scatter,
                            preferred_element_type=jnp.float32)        # (FP, N)

    # ---- layer finalize: CGConv residual + BatchNorm (batch stats over real nodes) ---
    @pl.when(e == n_chunks - 1)
    def _finalize():
        nmask = jnp.where(jax.lax.broadcasted_iota(jnp.int32, (1, N), 1) < n_real,
                          1.0, 0.0)
        x_new = x_scr[...] + agg_scr[...]
        inv_n = 1.0 / float(n_real)
        mean = jnp.sum(x_new * nmask, axis=1, keepdims=True) * inv_n   # (FP, 1)
        cent = (x_new - mean) * nmask
        var = jnp.sum(cent * cent, axis=1, keepdims=True) * inv_n
        # gamma/beta pad rows are 0 -> padded feature rows reset to 0 each layer.
        x_bn = (cent * jax.lax.rsqrt(var + BN_EPS) * gamma_ref[0] + beta_ref[0]) * nmask
        x_scr[...] = x_bn

        # ---- global_mean_pool on the last layer (lane-dense (N, G_pad) one-hot) ------
        @pl.when(l == n_layers - 1)
        def _pool():
            Gp = out_ref.shape[1]
            graph_ids = jax.lax.broadcasted_iota(jnp.int32, (N, Gp), 1)
            pool = jnp.where(graph_ids == batch_ref[...], 1.0, 0.0)    # pad batch=-1 excluded
            counts = jnp.sum(pool, axis=0, keepdims=True)              # (1, Gp)
            pooled = jnp.dot(x_bn, pool, preferred_element_type=jnp.float32)
            out_ref[...] = pooled / jnp.maximum(counts, 1.0)


def encoder_forward(x, edge_index, edge_attr, batch, params, num_graphs,
                    *, edge_block=256, use_bf16=True):
    x = jnp.asarray(x, jnp.float32)
    edge_attr = jnp.asarray(edge_attr, jnp.float32)
    N, F = x.shape
    E = int(edge_index.shape[1])
    D = int(edge_attr.shape[1])
    L = int(params["wf"].shape[0])
    G = int(num_graphs)

    FP = _round_up(F, 16)                     # feature rows padded (bf16 packing + aligned splits)
    FP2 = 2 * FP
    N_pad = _round_up(max(N, 128), 128)       # nodes on lanes
    TE = _round_up(min(max(E, 1), edge_block), 128)
    E_pad = _round_up(max(E, TE), TE)
    EC = E_pad // TE
    G_pad = _round_up(max(G, 1), 128)

    src = edge_index[0].astype(jnp.int32)
    dst = edge_index[1].astype(jnp.int32)

    # ---- transposed / padded operands (padded edges get index -1 -> zero one-hot) ----
    x_t = jnp.zeros((FP, N_pad), jnp.float32).at[:F, :N].set(x.T)
    dst_p = jnp.full((E_pad,), -1, jnp.int32).at[:E].set(dst)
    src_p = jnp.full((E_pad,), -1, jnp.int32).at[:E].set(src)
    # merged gather index row: per chunk c, lanes [0:TE]=dst chunk, [TE:2TE]=src chunk
    gidx = jnp.stack([dst_p.reshape(EC, TE), src_p.reshape(EC, TE)],
                     axis=1).reshape(1, EC * 2 * TE)
    dst_col = dst_p.reshape(E_pad, 1)
    batch_col = jnp.full((N_pad, 1), -1, jnp.int32).at[:N, 0].set(batch.astype(jnp.int32))
    ea_t = jnp.zeros((D, E_pad), jnp.float32).at[:, :E].set(edge_attr.T)

    # ---- per-layer weights: pre-transposed, split per z-block, 16-row padded ---------
    wf = params["wf"].astype(jnp.float32)     # (L, 2F+D, F)
    ws = params["ws"].astype(jnp.float32)
    wd = jnp.zeros((L, FP2, FP), jnp.float32)
    wd = wd.at[:, :F, :F].set(jnp.swapaxes(wf[:, :F, :], 1, 2))
    wd = wd.at[:, FP:FP + F, :F].set(jnp.swapaxes(ws[:, :F, :], 1, 2))
    wsrc = jnp.zeros((L, FP2, FP), jnp.float32)
    wsrc = wsrc.at[:, :F, :F].set(jnp.swapaxes(wf[:, F:2 * F, :], 1, 2))
    wsrc = wsrc.at[:, FP:FP + F, :F].set(jnp.swapaxes(ws[:, F:2 * F, :], 1, 2))
    wea = jnp.zeros((L, FP2, D), jnp.float32)
    wea = wea.at[:, :F, :].set(jnp.swapaxes(wf[:, 2 * F:, :], 1, 2))
    wea = wea.at[:, FP:FP + F, :].set(jnp.swapaxes(ws[:, 2 * F:, :], 1, 2))
    b_t = jnp.zeros((L, FP2, 1), jnp.float32)
    b_t = b_t.at[:, :F, 0].set(params["bf"].astype(jnp.float32))
    b_t = b_t.at[:, FP:FP + F, 0].set(params["bs"].astype(jnp.float32))
    gamma_t = jnp.zeros((L, FP, 1), jnp.float32).at[:, :F, 0].set(
        params["gamma"].astype(jnp.float32))
    beta_t = jnp.zeros((L, FP, 1), jnp.float32).at[:, :F, 0].set(
        params["beta"].astype(jnp.float32))

    gather_dtype = jnp.bfloat16 if use_bf16 else jnp.float32
    kernel = functools.partial(_encoder_kernel, N, gather_dtype)

    in_specs = [
        pl.BlockSpec(memory_space=pl.ANY),                          # x^T (HBM; copied once)
        pl.BlockSpec((1, 2 * TE), lambda l, e: (0, e)),             # merged [dst|src] gather ids
        pl.BlockSpec((TE, 1), lambda l, e: (e, 0)),                 # dst column (scatter one-hot)
        pl.BlockSpec((N_pad, 1), lambda l, e: (0, 0)),              # batch ids (column)
        pl.BlockSpec((D, TE), lambda l, e: (0, e)),                 # edge_attr^T chunk
        pl.BlockSpec((1, FP2, FP), lambda l, e: (l, 0, 0)),         # W_dst^T  (per layer)
        pl.BlockSpec((1, FP2, FP), lambda l, e: (l, 0, 0)),         # W_src^T
        pl.BlockSpec((1, FP2, D), lambda l, e: (l, 0, 0)),          # W_ea^T
        pl.BlockSpec((1, FP2, 1), lambda l, e: (l, 0, 0)),          # fused bias
        pl.BlockSpec((1, FP, 1), lambda l, e: (l, 0, 0)),           # BN gamma
        pl.BlockSpec((1, FP, 1), lambda l, e: (l, 0, 0)),           # BN beta
    ]
    out_spec = pl.BlockSpec((FP, G_pad), lambda l, e: (0, 0))
    scratch = [pltpu.VMEM((FP, N_pad), jnp.float32),    # node features carried across layers
               pltpu.VMEM((FP, N_pad), jnp.float32)]    # per-layer aggregation accumulator

    # VMEM budget: scratch + one-hots + temporaries + double-buffered chunk/weight blocks.
    gdt_b = 2 if use_bf16 else 4
    est = (3 * FP * N_pad * 4
           + 3 * TE * N_pad * gdt_b
           + (2 * FP * 2 * TE + 3 * FP2 * TE) * 4
           + 2 * (2 * TE + TE + D * TE) * 4
           + 2 * (FP2 * (2 * FP + D + 1) + 2 * FP) * 4
           + N_pad * 4 + FP * G_pad * 4)
    vmem_limit = int(min(48 * 2 ** 20, max(24 * 2 ** 20, 3 * est)))   # 48 MiB cap: v7x-safe

    flops_chunk = (2 * FP * N_pad * 2 * TE            # merged gather matmul
                   + 2 * FP * N_pad * TE              # scatter matmul
                   + 2 * FP2 * TE * (2 * FP + D))     # message weight matmuls
    cost = pl.CostEstimate(
        flops=int(L * EC * flops_chunk + 2 * FP * N_pad * G_pad),
        transcendentals=int(L * E_pad * 2 * FP),
        bytes_accessed=int(4 * (x_t.size + ea_t.size + gidx.size + dst_col.size
                                + batch_col.size + wd.size + wsrc.size + wea.size
                                + b_t.size + gamma_t.size + beta_t.size + FP * G_pad)))

    out_t = pl.pallas_call(
        kernel,
        out_shape=jax.ShapeDtypeStruct((FP, G_pad), jnp.float32),
        grid=(L, EC),
        in_specs=in_specs,
        out_specs=out_spec,
        scratch_shapes=scratch,
        compiler_params=pltpu.CompilerParams(
            dimension_semantics=("arbitrary", "arbitrary"),   # both axes carry scratch state
            vmem_limit_bytes=vmem_limit),
        cost_estimate=cost,
    )(x_t, gidx, dst_col, batch_col, ea_t, wd, wsrc, wea, b_t, gamma_t, beta_t)

    return out_t[:F, :G].T                     # (G, F)


def init_params(key, num_layers, input_dim, num_edge_attr):
    """Deterministic synthetic init matching the module's shapes."""
    in_dim = 2 * input_dim + num_edge_attr
    kf, ks, kbf, kbs = jax.random.split(key, 4)
    scale = 1.0 / np.sqrt(in_dim)
    return dict(
        wf=jax.random.uniform(kf, (num_layers, in_dim, input_dim), jnp.float32, -scale, scale),
        ws=jax.random.uniform(ks, (num_layers, in_dim, input_dim), jnp.float32, -scale, scale),
        bf=jax.random.uniform(kbf, (num_layers, input_dim), jnp.float32, -scale, scale),
        bs=jax.random.uniform(kbs, (num_layers, input_dim), jnp.float32, -scale, scale),
        gamma=jnp.ones((num_layers, input_dim), jnp.float32),
        beta=jnp.zeros((num_layers, input_dim), jnp.float32),
    )


def encoder_reference(x, edge_index, edge_attr, batch, params, num_graphs):
    """Pure-JAX reference for correctness checking."""
    src, dst = edge_index[0], edge_index[1]
    L = params["wf"].shape[0]
    for l in range(L):
        z = jnp.concatenate([x[dst], x[src], edge_attr], axis=1)
        f = z @ params["wf"][l] + params["bf"][l]
        s = z @ params["ws"][l] + params["bs"][l]
        msg = jax.nn.sigmoid(f) * jax.nn.softplus(s)
        agg = jnp.zeros_like(x).at[dst].add(msg)
        x = x + agg
        mean = x.mean(0, keepdims=True)
        var = jnp.square(x - mean).mean(0, keepdims=True)
        x = (x - mean) / jnp.sqrt(var + BN_EPS) * params["gamma"][l] + params["beta"][l]
    sums = jnp.zeros((num_graphs, x.shape[1]), x.dtype).at[batch].add(x)
    counts = jnp.zeros((num_graphs, 1), jnp.float32).at[batch].add(1.0)
    return sums / jnp.maximum(counts, 1.0)


if __name__ == "__main__":
    # small graph batch: 50 nodes, 300 edges, 2 graphs; feature dims from module defaults
    N, E, F, D, G, L = 50, 300, 20, 25, 2, 2
    key = jax.random.PRNGKey(0)
    kx, ksrc, kdst, kea, kp = jax.random.split(key, 5)
    x = jax.random.normal(kx, (N, F), jnp.float32)
    src = jax.random.randint(ksrc, (E,), 0, N, jnp.int32)
    dst = jax.random.randint(kdst, (E,), 0, N, jnp.int32)
    edge_index = jnp.stack([src, dst], axis=0)          # (2, E), PyG convention [src; dst]
    edge_attr = jax.random.normal(kea, (E, D), jnp.float32)
    batch = jnp.where(jnp.arange(N) < N // 2, 0, 1).astype(jnp.int32)
    params = init_params(kp, L, F, D)

    ref = encoder_reference(x, edge_index, edge_attr, batch, params, G)

    # exact f32 gather/scatter path; edge_block=128 with E=300 exercises 3 edge chunks
    out_f32 = encoder_forward(x, edge_index, edge_attr, batch, params, G,
                              edge_block=128, use_bf16=False)
    jax.block_until_ready(out_f32)
    np.testing.assert_allclose(np.asarray(out_f32), np.asarray(ref), rtol=2e-3, atol=2e-3)

    # fast path: bf16 one-hot / x / msg on the MXU (f32 accumulate, f32 message/BN math)
    out_bf16 = encoder_forward(x, edge_index, edge_attr, batch, params, G,
                               edge_block=128, use_bf16=True)
    jax.block_until_ready(out_bf16)
    np.testing.assert_allclose(np.asarray(out_bf16), np.asarray(ref), rtol=6e-2, atol=6e-2)

    print("KERNEL_OK")
</pallas_src>

<mosaic_0001>
module attributes {stable_mosaic.version = 11 : i64} {
  func.func @_encoder_kernel(%arg0: i32, %arg1: i32, %arg2: memref<32x128xf32, #tpu.memory_space<any>>, %arg3: memref<1x256xi32, #tpu.memory_space<vmem>>, %arg4: memref<128x1xi32, #tpu.memory_space<vmem>>, %arg5: memref<128x1xi32, #tpu.memory_space<vmem>>, %arg6: memref<25x128xf32, #tpu.memory_space<vmem>>, %arg7: memref<1x64x32xf32, #tpu.memory_space<vmem>>, %arg8: memref<1x64x32xf32, #tpu.memory_space<vmem>>, %arg9: memref<1x64x25xf32, #tpu.memory_space<vmem>>, %arg10: memref<1x64x1xf32, #tpu.memory_space<vmem>>, %arg11: memref<1x32x1xf32, #tpu.memory_space<vmem>>, %arg12: memref<1x32x1xf32, #tpu.memory_space<vmem>>, %arg13: memref<32x128xf32, #tpu.memory_space<vmem>>, %arg14: memref<32x128xf32, #tpu.memory_space<vmem>>, %arg15: memref<32x128xf32, #tpu.memory_space<vmem>>) attributes {dimension_semantics = [#tpu.dimension_semantics<arbitrary>, #tpu.dimension_semantics<arbitrary>], iteration_bounds = array<i64: 2, 3>, scalar_prefetch = 0 : i64, scratch_operands = 2 : i64, tpu.core_type = #tpu.core_type<tc>, window_params = [{}, {transform_indices = @transform_1, window_bounds = array<i64: 1, 256>}, {transform_indices = @transform_2, window_bounds = array<i64: 128, 1>}, {pipeline_mode = #tpu.pipeline_mode<synchronous>, transform_indices = @transform_3, window_bounds = array<i64: 128, 1>}, {transform_indices = @transform_4, window_bounds = array<i64: 25, 128>}, {transform_indices = @transform_5, window_bounds = array<i64: 1, 64, 32>}, {transform_indices = @transform_6, window_bounds = array<i64: 1, 64, 32>}, {transform_indices = @transform_7, window_bounds = array<i64: 1, 64, 25>}, {transform_indices = @transform_8, window_bounds = array<i64: 1, 64, 1>}, {transform_indices = @transform_9, window_bounds = array<i64: 1, 32, 1>}, {transform_indices = @transform_10, window_bounds = array<i64: 1, 32, 1>}, {pipeline_mode = #tpu.pipeline_mode<synchronous>, transform_indices = @transform_11, window_bounds = array<i64: 32, 128>}]} {
    %c0_i32 = arith.constant 0 : i32
    %0 = arith.cmpi eq, %arg0, %c0_i32 : i32
    %c0_i32_0 = arith.constant 0 : i32
    %1 = arith.cmpi eq, %arg1, %c0_i32_0 : i32
    %2 = arith.andi %0, %1 : i1
    %3 = arith.extui %2 : i1 to i32
    %c0_i32_1 = arith.constant 0 : i32
    %4 = arith.cmpi ne, %3, %c0_i32_1 : i32
    scf.if %4 {
      "tpu.region"() ({
        %73 = tpu.sem_alloc : memref<!tpu.dma_semaphore, #tpu.memory_space<semaphore_mem>>
        tpu.enqueue_dma source(%arg2 : memref<32x128xf32, #tpu.memory_space<any>>) target(%arg14 : memref<32x128xf32, #tpu.memory_space<vmem>>) target_semaphore(%73 : memref<!tpu.dma_semaphore, #tpu.memory_space<semaphore_mem>>)
        tpu.wait_dma2 semaphore(%73 : memref<!tpu.dma_semaphore, #tpu.memory_space<semaphore_mem>>) src(%arg2 : memref<32x128xf32, #tpu.memory_space<any>>) dst(%arg14 : memref<32x128xf32, #tpu.memory_space<vmem>>)
        tpu.yield
      }) : () -> ()
      %cst_39 = arith.constant 0.000000e+00 : f32
      %71 = vector.broadcast %cst_39 : f32 to vector<32x128xf32>
      %c0_40 = arith.constant 0 : index
      %c0_41 = arith.constant 0 : index
      %72 = vector.load %arg13[%c0_40, %c0_41] : memref<32x128xf32, #tpu.memory_space<vmem>>, vector<32x128xf32>
      tpu.vector_store %arg13[%c0_40, %c0_41], %71 {strides = array<i32>} : memref<32x128xf32, #tpu.memory_space<vmem>>, vector<32x128xf32>,
    } else {
    }
    %c0_i32_2 = arith.constant 0 : i32
    %5 = arith.cmpi eq, %arg1, %c0_i32_2 : i32
    %6 = arith.extui %5 : i1 to i32
    %c0_i32_3 = arith.constant 0 : i32
    %7 = arith.cmpi ne, %6, %c0_i32_3 : i32
    scf.if %7 {
      %cst_39 = arith.constant 0.000000e+00 : f32
      %71 = vector.broadcast %cst_39 : f32 to vector<32x128xf32>
      %c0_40 = arith.constant 0 : index
      %c0_41 = arith.constant 0 : index
      %72 = vector.load %arg15[%c0_40, %c0_41] : memref<32x128xf32, #tpu.memory_space<vmem>>, vector<32x128xf32>
      tpu.vector_store %arg15[%c0_40, %c0_41], %71 {strides = array<i32>} : memref<32x128xf32, #tpu.memory_space<vmem>>, vector<32x128xf32>,
    } else {
    }
    %8 = tpu.iota {dimensions = array<i32: 0>} : vector<128x256xi32>
    %c0 = arith.constant 0 : index
    %c0_4 = arith.constant 0 : index
    %9 = vector.load %arg3[%c0, %c0_4] : memref<1x256xi32, #tpu.memory_space<vmem>>, vector<1x256xi32>
    %10 = vector.broadcast %9 : vector<1x256xi32> to vector<128x256xi32>
    %11 = arith.cmpi eq, %8, %10 : vector<128x256xi32>
    %cst = arith.constant 1.000000e+00 : f32
    %cst_5 = arith.constant 0.000000e+00 : f32
    %12 = vector.broadcast %cst : f32 to vector<128x256xf32>
    %13 = vector.broadcast %cst_5 : f32 to vector<128x256xf32>
    %14 = arith.select %11, %12, %13 : vector<128x256xi1>, vector<128x256xf32>
    %c0_6 = arith.constant 0 : index
    %c0_7 = arith.constant 0 : index
    %15 = vector.load %arg14[%c0_6, %c0_7] : memref<32x128xf32, #tpu.memory_space<vmem>>, vector<32x128xf32>
    %cst_8 = arith.constant dense<0.000000e+00> : vector<32x256xf32>
    %16 = tpu.matmul %15, %14, %cst_8 {dimension_numbers = #tpu.dot_dimension_numbers<[1], [0], [0], [1], [0, 0, 1, 1], [], []>} : vector<32x128xf32>, vector<128x256xf32>, vector<32x256xf32> -> vector<32x256xf32>
    %17 = vector.extract_strided_slice %16 {offsets = [0, 0], sizes = [32, 128], strides = [1, 1]} : vector<32x256xf32> to vector<32x128xf32>
    %18 = vector.extract_strided_slice %16 {offsets = [0, 128], sizes = [32, 128], strides = [1, 1]} : vector<32x256xf32> to vector<32x128xf32>
    %c0_9 = arith.constant 0 : index
    %c0_10 = arith.constant 0 : index
    %c0_11 = arith.constant 0 : index
    %19 = vector.load %arg7[%c0_9, %c0_10, %c0_11] : memref<1x64x32xf32, #tpu.memory_space<vmem>>, vector<1x64x32xf32>
    %20 = vector.shape_cast %19 : vector<1x64x32xf32> to vector<64x32xf32>
    %cst_12 = arith.constant dense<0.000000e+00> : vector<64x128xf32>
    %21 = tpu.matmul %20, %17, %cst_12 {dimension_numbers = #tpu.dot_dimension_numbers<[1], [0], [0], [1], [0, 0, 1, 1], [], []>} : vector<64x32xf32>, vector<32x128xf32>, vector<64x128xf32> -> vector<64x128xf32>
    %c0_13 = arith.constant 0 : index
    %c0_14 = arith.constant 0 : index
    %c0_15 = arith.constant 0 : index
    %22 = vector.load %arg8[%c0_13, %c0_14, %c0_15] : memref<1x64x32xf32, #tpu.memory_space<vmem>>, vector<1x64x32xf32>
    %23 = vector.shape_cast %22 : vector<1x64x32xf32> to vector<64x32xf32>
    %cst_16 = arith.constant dense<0.000000e+00> : vector<64x128xf32>
    %24 = tpu.matmul %23, %18, %cst_16 {dimension_numbers = #tpu.dot_dimension_numbers<[1], [0], [0], [1], [0, 0, 1, 1], [], []>} : vector<64x32xf32>, vector<32x128xf32>, vector<64x128xf32> -> vector<64x128xf32>
    %25 = arith.addf %21, %24 : vector<64x128xf32>
    %c0_17 = arith.constant 0 : index
    %c0_18 = arith.constant 0 : index
    %c0_19 = arith.constant 0 : index
    %26 = vector.load %arg9[%c0_17, %c0_18, %c0_19] : memref<1x64x25xf32, #tpu.memory_space<vmem>>, vector<1x64x25xf32>
    %27 = vector.shape_cast %26 : vector<1x64x25xf32> to vector<64x25xf32>
    %c0_20 = arith.constant 0 : index
    %c0_21 = arith.constant 0 : index
    %28 = vector.load %arg6[%c0_20, %c0_21] : memref<25x128xf32, #tpu.memory_space<vmem>>, vector<25x128xf32>
    %cst_22 = arith.constant dense<0.000000e+00> : vector<64x128xf32>
    %29 = tpu.matmul %27, %28, %cst_22 {dimension_numbers = #tpu.dot_dimension_numbers<[1], [0], [0], [1], [0, 0, 1, 1], [], []>} : vector<64x25xf32>, vector<25x128xf32>, vector<64x128xf32> -> vector<64x128xf32>
    %30 = arith.addf %25, %29 : vector<64x128xf32>
    %c0_23 = arith.constant 0 : index
    %c0_24 = arith.constant 0 : index
    %c0_25 = arith.constant 0 : index
    %31 = vector.load %arg10[%c0_23, %c0_24, %c0_25] : memref<1x64x1xf32, #tpu.memory_space<vmem>>, vector<1x64x1xf32>
    %32 = vector.shape_cast %31 : vector<1x64x1xf32> to vector<64x1xf32>
    %33 = vector.broadcast %32 : vector<64x1xf32> to vector<64x128xf32>
    %34 = arith.addf %30, %33 : vector<64x128xf32>
    %35 = vector.extract_strided_slice %34 {offsets = [0, 0], sizes = [32, 128], strides = [1, 1]} : vector<64x128xf32> to vector<32x128xf32>
    %36 = arith.negf %35 : vector<32x128xf32>
    %37 = math.exp %36 : vector<32x128xf32>
    %cst_26 = arith.constant 1.000000e+00 : f32
    %38 = vector.broadcast %cst_26 : f32 to vector<32x128xf32>
    %39 = arith.addf %38, %37 : vector<32x128xf32>
    %40 = arith.divf %38, %39 : vector<32x128xf32>
    %41 = vector.extract_strided_slice %34 {offsets = [32, 0], sizes = [32, 128], strides = [1, 1]} : vector<64x128xf32> to vector<32x128xf32>
    %cst_27 = arith.constant 0.000000e+00 : f32
    %42 = vector.broadcast %cst_27 : f32 to vector<32x128xf32>
    %43 = arith.maximumf %41, %42 : vector<32x128xf32>
    %44 = vector.broadcast %cst_27 : f32 to vector<32x128xf32>
    %45 = arith.subf %41, %44 : vector<32x128xf32>
    %46 = arith.cmpf one, %45, %45 : vector<32x128xf32>
    %47 = vector.broadcast %cst_27 : f32 to vector<32x128xf32>
    %48 = arith.addf %41, %47 : vector<32x128xf32>
    %49 = math.absf %45 : vector<32x128xf32>
    %cst_28 = arith.constant 0.000000e+00 : f32
    %50 = vector.broadcast %cst_28 : f32 to vector<32x128xf32>
    %51 = arith.subf %50, %49 : vector<32x128xf32>
    %52 = math.exp %51 : vector<32x128xf32>
    %53 = math.log1p %52 : vector<32x128xf32>
    %54 = arith.addf %43, %53 : vector<32x128xf32>
    %55 = arith.select %46, %48, %54 : vector<32x128xi1>, vector<32x128xf32>
    %56 = arith.mulf %40, %55 : vector<32x128xf32>
    %57 = tpu.iota {dimensions = array<i32: 1>} : vector<128x128xi32>
    %c0_29 = arith.constant 0 : index
    %c0_30 = arith.constant 0 : index
    %58 = vector.load %arg4[%c0_29, %c0_30] : memref<128x1xi32, #tpu.memory_space<vmem>>, vector<128x1xi32>
    %59 = vector.broadcast %58 : vector<128x1xi32> to vector<128x128xi32>
    %60 = arith.cmpi eq, %57, %59 : vector<128x128xi32>
    %cst_31 = arith.constant 1.000000e+00 : f32
    %cst_32 = arith.constant 0.000000e+00 : f32
    %61 = vector.broadcast %cst_31 : f32 to vector<128x128xf32>
    %62 = vector.broadcast %cst_32 : f32 to vector<128x128xf32>
    %63 = arith.select %60, %61, %62 : vector<128x128xi1>, vector<128x128xf32>
    %c0_33 = arith.constant 0 : index
    %c0_34 = arith.constant 0 : index
    %64 = vector.load %arg15[%c0_33, %c0_34] : memref<32x128xf32, #tpu.memory_space<vmem>>, vector<32x128xf32>
    %cst_35 = arith.constant dense<0.000000e+00> : vector<32x128xf32>
    %65 = tpu.matmul %56, %63, %cst_35 {dimension_numbers = #tpu.dot_dimension_numbers<[1], [0], [0], [1], [0, 0, 1, 1], [], []>} : vector<32x128xf32>, vector<128x128xf32>, vector<32x128xf32> -> vector<32x128xf32>
    %66 = arith.addf %64, %65 : vector<32x128xf32>
    %c0_36 = arith.constant 0 : index
    %c0_37 = arith.constant 0 : index
    %67 = vector.load %arg15[%c0_36, %c0_37] : memref<32x128xf32, #tpu.memory_space<vmem>>, vector<32x128xf32>
    tpu.vector_store %arg15[%c0_36, %c0_37], %66 {strides = array<i32>} : memref<32x128xf32, #tpu.memory_space<vmem>>, vector<32x128xf32>,
    %c2_i32 = arith.constant 2 : i32
    %68 = arith.cmpi eq, %arg1, %c2_i32 : i32
    %69 = arith.extui %68 : i1 to i32
    %c0_i32_38 = arith.constant 0 : i32
    %70 = arith.cmpi ne, %69, %c0_i32_38 : i32
    scf.if %70 {
      %71 = tpu.iota {dimensions = array<i32: 1>} : vector<1x128xi32>
      %c50_i32 = arith.constant 50 : i32
      %72 = vector.broadcast %c50_i32 : i32 to vector<1x128xi32>
      %73 = arith.cmpi slt, %71, %72 : vector<1x128xi32>
      %cst_39 = arith.constant 1.000000e+00 : f32
      %cst_40 = arith.constant 0.000000e+00 : f32
      %74 = vector.broadcast %cst_39 : f32 to vector<1x128xf32>
      %75 = vector.broadcast %cst_40 : f32 to vector<1x128xf32>
      %76 = arith.select %73, %74, %75 : vector<1x128xi1>, vector<1x128xf32>
      %c0_41 = arith.constant 0 : index
      %c0_42 = arith.constant 0 : index
      %77 = vector.load %arg14[%c0_41, %c0_42] : memref<32x128xf32, #tpu.memory_space<vmem>>, vector<32x128xf32>
      %c0_43 = arith.constant 0 : index
      %c0_44 = arith.constant 0 : index
      %78 = vector.load %arg15[%c0_43, %c0_44] : memref<32x128xf32, #tpu.memory_space<vmem>>, vector<32x128xf32>
      %79 = arith.addf %77, %78 : vector<32x128xf32>
      %80 = vector.broadcast %76 : vector<1x128xf32> to vector<32x128xf32>
      %81 = arith.mulf %79, %80 : vector<32x128xf32>
      %cst_45 = arith.constant dense<0.000000e+00> : vector<32xf32>
      %82 = vector.multi_reduction <add>, %81, %cst_45 [1] : vector<32x128xf32> to vector<32xf32>
      %83 = vector.shape_cast %82 : vector<32xf32> to vector<32x1xf32>
      %cst_46 = arith.constant 2.000000e-02 : f32
      %84 = vector.broadcast %cst_46 : f32 to vector<32x1xf32>
      %85 = arith.mulf %83, %84 : vector<32x1xf32>
      %86 = vector.broadcast %85 : vector<32x1xf32> to vector<32x128xf32>
      %87 = arith.subf %79, %86 : vector<32x128xf32>
      %88 = vector.broadcast %76 : vector<1x128xf32> to vector<32x128xf32>
      %89 = arith.mulf %87, %88 : vector<32x128xf32>
      %90 = arith.mulf %89, %89 : vector<32x128xf32>
      %cst_47 = arith.constant dense<0.000000e+00> : vector<32xf32>
      %91 = vector.multi_reduction <add>, %90, %cst_47 [1] : vector<32x128xf32> to vector<32xf32>
      %92 = vector.shape_cast %91 : vector<32xf32> to vector<32x1xf32>
      %cst_48 = arith.constant 2.000000e-02 : f32
      %93 = vector.broadcast %cst_48 : f32 to vector<32x1xf32>
      %94 = arith.mulf %92, %93 : vector<32x1xf32>
      %cst_49 = arith.constant 9.99999974E-6 : f32
      %95 = vector.broadcast %cst_49 : f32 to vector<32x1xf32>
      %96 = arith.addf %94, %95 : vector<32x1xf32>
      %97 = math.rsqrt %96 : vector<32x1xf32>
      %98 = vector.broadcast %97 : vector<32x1xf32> to vector<32x128xf32>
      %99 = arith.mulf %89, %98 : vector<32x128xf32>
      %c0_50 = arith.constant 0 : index
      %c0_51 = arith.constant 0 : index
      %c0_52 = arith.constant 0 : index
      %100 = vector.load %arg11[%c0_50, %c0_51, %c0_52] : memref<1x32x1xf32, #tpu.memory_space<vmem>>, vector<1x32x1xf32>
      %101 = vector.shape_cast %100 : vector<1x32x1xf32> to vector<32x1xf32>
      %102 = vector.broadcast %101 : vector<32x1xf32> to vector<32x128xf32>
      %103 = arith.mulf %99, %102 : vector<32x128xf32>
      %c0_53 = arith.constant 0 : index
      %c0_54 = arith.constant 0 : index
      %c0_55 = arith.constant 0 : index
      %104 = vector.load %arg12[%c0_53, %c0_54, %c0_55] : memref<1x32x1xf32, #tpu.memory_space<vmem>>, vector<1x32x1xf32>
      %105 = vector.shape_cast %104 : vector<1x32x1xf32> to vector<32x1xf32>
      %106 = vector.broadcast %105 : vector<32x1xf32> to vector<32x128xf32>
      %107 = arith.addf %103, %106 : vector<32x128xf32>
      %108 = vector.broadcast %76 : vector<1x128xf32> to vector<32x128xf32>
      %109 = arith.mulf %107, %108 : vector<32x128xf32>
      %c0_56 = arith.constant 0 : index
      %c0_57 = arith.constant 0 : index
      %110 = vector.load %arg14[%c0_56, %c0_57] : memref<32x128xf32, #tpu.memory_space<vmem>>, vector<32x128xf32>
      tpu.vector_store %arg14[%c0_56, %c0_57], %109 {strides = array<i32>} : memref<32x128xf32, #tpu.memory_space<vmem>>, vector<32x128xf32>,
      %c1_i32 = arith.constant 1 : i32
      %111 = arith.cmpi eq, %arg0, %c1_i32 : i32
      %112 = arith.extui %111 : i1 to i32
      %c0_i32_58 = arith.constant 0 : i32
      %113 = arith.cmpi ne, %112, %c0_i32_58 : i32
      scf.if %113 {
        %114 = tpu.iota {dimensions = array<i32: 1>} : vector<128x128xi32>
        %c0_59 = arith.constant 0 : index
        %c0_60 = arith.constant 0 : index
        %115 = vector.load %arg5[%c0_59, %c0_60] : memref<128x1xi32, #tpu.memory_space<vmem>>, vector<128x1xi32>
        %116 = vector.broadcast %115 : vector<128x1xi32> to vector<128x128xi32>
        %117 = arith.cmpi eq, %114, %116 : vector<128x128xi32>
        %cst_61 = arith.constant 1.000000e+00 : f32
        %cst_62 = arith.constant 0.000000e+00 : f32
        %118 = vector.broadcast %cst_61 : f32 to vector<128x128xf32>
        %119 = vector.broadcast %cst_62 : f32 to vector<128x128xf32>
        %120 = arith.select %117, %118, %119 : vector<128x128xi1>, vector<128x128xf32>
        %cst_63 = arith.constant dense<0.000000e+00> : vector<128xf32>
        %121 = vector.multi_reduction <add>, %120, %cst_63 [0] : vector<128x128xf32> to vector<128xf32>
        %122 = vector.shape_cast %121 : vector<128xf32> to vector<1x128xf32>
        %cst_64 = arith.constant dense<0.000000e+00> : vector<32x128xf32>
        %123 = tpu.matmul %109, %120, %cst_64 {dimension_numbers = #tpu.dot_dimension_numbers<[1], [0], [0], [1], [0, 0, 1, 1], [], []>} : vector<32x128xf32>, vector<128x128xf32>, vector<32x128xf32> -> vector<32x128xf32>
        %cst_65 = arith.constant 1.000000e+00 : f32
        %124 = vector.broadcast %cst_65 : f32 to vector<1x128xf32>
        %125 = arith.maximumf %122, %124 : vector<1x128xf32>
        %126 = vector.broadcast %125 : vector<1x128xf32> to vector<32x128xf32>
        %127 = arith.divf %123, %126 : vector<32x128xf32>
        %c0_66 = arith.constant 0 : index
        %c0_67 = arith.constant 0 : index
        %128 = vector.load %arg13[%c0_66, %c0_67] : memref<32x128xf32, #tpu.memory_space<vmem>>, vector<32x128xf32>
        tpu.vector_store %arg13[%c0_66, %c0_67], %127 {strides = array<i32>} : memref<32x128xf32, #tpu.memory_space<vmem>>, vector<32x128xf32>,
      } else {
      }
    } else {
    }
    return
  }
  func.func @transform_1(%arg0: i32, %arg1: i32) -> (i32, i32) {
    %c0_i32 = arith.constant 0 : i32
    %c0_i32_0 = arith.constant 0 : i32
    return %c0_i32, %arg1 : i32, i32
  }
  func.func @transform_2(%arg0: i32, %arg1: i32) -> (i32, i32) {
    %c0_i32 = arith.constant 0 : i32
    %c0_i32_0 = arith.constant 0 : i32
    return %arg1, %c0_i32 : i32, i32
  }
  func.func @transform_3(%arg0: i32, %arg1: i32) -> (i32, i32) {
    %c0_i32 = arith.constant 0 : i32
    %c0_i32_0 = arith.constant 0 : i32
    %c0_i32_1 = arith.constant 0 : i32
    return %c0_i32, %c0_i32_0 : i32, i32
  }
  func.func @transform_4(%arg0: i32, %arg1: i32) -> (i32, i32) {
    %c0_i32 = arith.constant 0 : i32
    %c0_i32_0 = arith.constant 0 : i32
    return %c0_i32, %arg1 : i32, i32
  }
  func.func @transform_5(%arg0: i32, %arg1: i32) -> (i32, i32, i32) {
    %c0_i32 = arith.constant 0 : i32
    %c0_i32_0 = arith.constant 0 : i32
    %c0_i32_1 = arith.constant 0 : i32
    return %arg0, %c0_i32, %c0_i32_0 : i32, i32, i32
  }
  func.func @transform_6(%arg0: i32, %arg1: i32) -> (i32, i32, i32) {
    %c0_i32 = arith.constant 0 : i32
    %c0_i32_0 = arith.constant 0 : i32
    %c0_i32_1 = arith.constant 0 : i32
    return %arg0, %c0_i32, %c0_i32_0 : i32, i32, i32
  }
  func.func @transform_7(%arg0: i32, %arg1: i32) -> (i32, i32, i32) {
    %c0_i32 = arith.constant 0 : i32
    %c0_i32_0 = arith.constant 0 : i32
    %c0_i32_1 = arith.constant 0 : i32
    return %arg0, %c0_i32, %c0_i32_0 : i32, i32, i32
  }
  func.func @transform_8(%arg0: i32, %arg1: i32) -> (i32, i32, i32) {
    %c0_i32 = arith.constant 0 : i32
    %c0_i32_0 = arith.constant 0 : i32
    %c0_i32_1 = arith.constant 0 : i32
    return %arg0, %c0_i32, %c0_i32_0 : i32, i32, i32
  }
  func.func @transform_9(%arg0: i32, %arg1: i32) -> (i32, i32, i32) {
    %c0_i32 = arith.constant 0 : i32
    %c0_i32_0 = arith.constant 0 : i32
    %c0_i32_1 = arith.constant 0 : i32
    return %arg0, %c0_i32, %c0_i32_0 : i32, i32, i32
  }
  func.func @transform_10(%arg0: i32, %arg1: i32) -> (i32, i32, i32) {
    %c0_i32 = arith.constant 0 : i32
    %c0_i32_0 = arith.constant 0 : i32
    %c0_i32_1 = arith.constant 0 : i32
    return %arg0, %c0_i32, %c0_i32_0 : i32, i32, i32
  }
  func.func @transform_11(%arg0: i32, %arg1: i32) -> (i32, i32) {
    %c0_i32 = arith.constant 0 : i32
    %c0_i32_0 = arith.constant 0 : i32
    %c0_i32_1 = arith.constant 0 : i32
    return %c0_i32, %c0_i32_0 : i32, i32
  }
}

</mosaic_0001>

<bundles_post_ra>
// kernel: tpu_custom_call.1
= control target key start
LH: loop header
LB: loop body
LE: loop exit
PB: predicated region body
PF: predicated region fallthrough
CT: control target
= control target key end

     0   :  { %s3466_s0 = inlined_call_operand.vmem [shape: f32[32,128], index: 0, kind: input, shape index: {}]   ;;  %s3467_s1 = inlined_call_operand.vmem [shape: s32[1,768], index: 1, kind: input, shape index: {}]   ;;  %s3468_s2 = inlined_call_operand.vmem [shape: s32[384,1], index: 2, kind: input, shape index: {}]   ;;  %s3469_s3 = inlined_call_operand.vmem [shape: s32[128,1], index: 3, kind: input, shape index: {}]   ;;  %s3470_s4 = inlined_call_operand.vmem [shape: f32[25,384], index: 4, kind: input, shape index: {}]   ;;  %s3471_s5 = inlined_call_operand.vmem [shape: f32[2,64,32], index: 5, kind: input, shape index: {}]   ;;  %s3472_s6 = inlined_call_operand.vmem [shape: f32[2,64,32], index: 6, kind: input, shape index: {}]   ;;  %s3473_s7 = inlined_call_operand.vmem [shape: f32[2,64,25], index: 7, kind: input, shape index: {}]   ;;  %s3474_s8 = inlined_call_operand.vmem [shape: f32[2,64,1], index: 8, kind: input, shape index: {}]   ;;  %s3475_s9 = inlined_call_operand.vmem [shape: f32[2,32,1], index: 9, kind: input, shape index: {}]   ;;  %s3476_s10 = inlined_call_operand.vmem [shape: f32[2,32,1], index: 10, kind: input, shape index: {}]   ;;  %s3477_s11 = inlined_call_operand.hbm [shape: f32[32,128], index: 11, kind: output, shape index: {}]  }
   0x1   :  { %3483 = sst [smem:[#allocation17_spill]] %s3468_s2 }
   0x2   :  { %3484 = sst [smem:[#allocation18_spill]] %s3470_s4 }
   0x3   :  { %3485 = sst [smem:[#allocation19_spill]] %s3471_s5 }
   0x4   :  { %3486 = sst [smem:[#allocation20_spill]] %s3472_s6 }
   0x5   :  { %3487 = sst [smem:[#allocation21_spill]] %s3477_s11 }
   0x6   :  { %16 = vsyncpa [#allocation6], 0  ;;  %s2894_s17 = smov 0   ;;  %s2896_s18 = smov 0  }
   0x7   :  { %s2898_s19 = smov 0   ;;  %s2900_s20 = smov 0  }
   0x8   :  { %s2902_s21 = smov 0   ;;  %s2904_s22 = smov 0  }
   0x9   :  { %s2906_s23 = smov 0  }
   0xa LB: > { %3488 = sst [smem:[#allocation11_spill]] %s2798_s18  ;;  %s31_s25 = sadd.s32 1, %s2810_s21  ;;  %s2818_s23 = sphi %s2906_s23, %s22_s23   ;;  %s2814_s22 = sphi %s2904_s22, %s3509_s22   ;;  %s2810_s21 = sphi %s2902_s21, %s3508_s21   ;;  %s2806_s20 = sphi %s2900_s20, %s3507_s20   ;;  %s2802_s19 = sphi %s2898_s19, %s3506_s19   ;;  %s2798_s18 = sphi %s2896_s18, %s3505_s18   ;;  %s2794_s17 = sphi %s2894_s17, %s3504_s17  }
   0xb   : > { %3489 = sst [smem:[#allocation12_spill]] %s2810_s21  ;;  %p32_p0 = scmp.ge.s32.totalorder %s31_s25, 3 }
   0xc   : > { %3490 = sst [smem:[#allocation13_spill]] %s2814_s22  ;;  %s34_s26 = sadd.s32 1, %s2814_s22 }
   0xd   : > { %s114_s27 = sadd.s32 1, %s2798_s18  ;;  %p121_p1 = scmp.ne.s32.totalorder %s2798_s18, %s2794_s17 }
   0xe   : > { %s3511_s25 = smov (%p32_p0, %s31_s25), 0  ;;  %s3513_s26 = smov (!%p32_p0, %s34_s26), %s2814_s22 }
   0xf   : > { %3491 = sst [smem:[#allocation14_spill]] %s3511_s25  ;;  %s111_s28 = ssub.s32 %s2810_s21, %s3511_s25 }
  0x10   : > { %p122_p2 = scmp.eq.s32.totalorder %s2818_s23, 0  ;;  %p36_p3 = scmp.ge.s32.totalorder %s3513_s26, 2 }
  0x11   : > { %p112_p4 = scmp.eq.s32.totalorder %s111_s28, 0  ;;  %p2116_p6 = scmp.ge.s32.totalorder %s2818_s23, 6 }
  0x12   : > { %p123_p5 = por %p122_p2, %p121_p1  ;;  %s3515_s26 = smov (%p36_p3, %s3513_s26), 0 }
  0x13   : > { %3492 = sst [smem:[#allocation15_spill]] %s3515_s26  ;;  %327 = sbr.rel (%p2116_p6) target bundleno = 38 (0x26), region = 20 }
  0x14   : > { %s2944_s29 = scalar_select %p112_p4, %s2798_s18, %s114_s27  }
  0x16   : > { %3493 = sst [smem:[#allocation16_spill]] %s2944_s29 }
  0x1a   : > { %347 = sbr.rel (!%p123_p5) target bundleno = 38 (0x26), region = 32  ;;  %s349_s30 = sand.u32 (%p123_p5), 1, %s2798_s18  }
  0x1b   : > { %s2118_s12 = sshll.u32 (%p123_p5), %s2810_s21, 3  ;;  %s2117_s13 = sshll.u32 (%p123_p5), %s349_s30, 5 }
  0x1c   : > { %s3494_s4 = sld [smem:[#allocation18_spill]] (%p123_p5)  ;;  %s351_s28 = scalar_lea.vmem (%p123_p5), [#allocation4], %s2117_s13 }
  0x22   : > { %s353_s16 = scalar_lea.vmem %s3494_s4, %s2118_s12 }
  0x23   : > { %v387_v0 = vld [vmem:[%s353_s16] sm:$0xff]  ;;  %v389_v1 = vld [vmem:[%s353_s16 + $0x18] sm:$0xff]  ;;  %v391_v2 = vld [vmem:[%s353_s16 + $0x30] sm:$0xff] }
  0x24   : > { %388 = vst [vmem:[%s351_s28] sm:$0xff] %v387_v0  ;;  %390 = vst [vmem:[%s351_s28 + $0x8] sm:$0xff] %v389_v1  ;;  %v393_v3 = vld [vmem:[%s353_s16 + $0x48] sm:$0xff] }
  0x25   : > { %392 = vst [vmem:[%s351_s28 + $0x10] sm:$0xff] %v391_v2  ;;  %394 = vst [vmem:[%s351_s28 + $0x18] sm:$0xff] %v393_v3 }
  0x26 PF: > { %p2119_p7 = scmp.ge.s32.totalorder %s2818_s23, 1  ;;  %p447_p8 = scmp.lt.s32.totalorder %s2818_s23, 7 }
  0x28   : > { %p448_p9 = pnand %p2119_p7, %p447_p8 }
  0x29   : > { %s454_s27 = sand.u32 (!%p448_p9), 1, %s2794_s17   ;;  %s2121_s30 = sshll.u32 (!%p448_p9), %s2802_s19, 1 }
  0x2a   : > { %451 = sbr.rel (%p448_p9) target bundleno = 1667 (0x683), region = 94  ;;  %s2120_s12 = sshll.u32 (!%p448_p9), %s454_s27, 5 }
  0x2b   : > { %p526_p10 = scmp.lt.s32.totalorder (!%p448_p9), %s2121_s30, 5  ;;  %s2122_s13 = sshll.u32 (!%p448_p9), %s2802_s19, 4 }
  0x2c   : > { %p531_p11 = scmp.lt.s32.totalorder (!%p448_p9), %s2122_s13, 47  ;;  %p536_p12 = scmp.lt.s32.totalorder (!%p448_p9), %s2806_s20, 1 }
  0x2d   : > { %p566_p13 = scmp.eq.s32.totalorder (!%p448_p9), %s2806_s20, 0  ;;  %p567_p0 = scmp.eq.s32.totalorder (!%p448_p9), %s2802_s19, 0 }
  0x2e   : > { %s3495_s2 = sld [smem:[#allocation17_spill]] (!%p448_p9)  ;;  %s3496_s5 = sld [smem:[#allocation19_spill]] (!%p448_p9) }
  0x2f   : > { %s3497_s6 = sld [smem:[#allocation20_spill]] (!%p448_p9)  ;;  %p568_p1 = pnand (!%p448_p9), %p567_p0, %p566_p13 }
  0x30   : > { %s3002_s16 = scalar_lea.vmem (!%p448_p9), [#allocation4], %s2120_s12 }
  0x31   : > { %s3517_s30 = smov (!%p526_p10, %s2121_s30), 5  ;;  %s3519_s13 = smov (!%p531_p11, %s2122_s13), 47 }
  0x32   : > { %s537_s28 = scalar_select %p536_p12, %s2806_s20, 1 }
  0x33   : > { %s2123_s24 = sshll.u32 %s3519_s13, 3  ;;  %571 = sbr.rel (%p568_p1) target bundleno = 66 (0x42), region = 102 }
  0x34   : > { %s2970_s27 = scalar_lea.vmem %s3495_s2, %s2123_s24  ;;  %s2236_s26 = sshll.u32 %s537_s28, 6 }
  0x35   : > { %s2975_s21 = scalar_lea.vmem %s3496_s5, %s2236_s26  ;;  %s2980_s14 = scalar_lea.vmem %s3497_s6, %s2236_s26 }
  0x36   : > { %s2985_s13 = scalar_lea.vmem %s3473_s7, %s2236_s26  ;;  %s2990_s24 = scalar_lea.vmem %s3474_s8, %s2236_s26 }
  0x37   : > { %s2240_s17 = sshll.u32 %s537_s28, 5 }
  0x38   : > { %s2995_s2 = scalar_lea.vmem %s3475_s9, %s2240_s17  ;;  %s3000_s5 = scalar_lea.vmem %s3476_s10, %s2240_s17 }
  0x3a   : > { %v604_v4 = vld [vmem:[%s3466_s0] sm:$0xff]  ;;  %v606_v5 = vld [vmem:[%s3466_s0 + $0x8] sm:$0xff]  ;;  %v608_v6 = vld [vmem:[%s3466_s0 + $0x10] sm:$0xff] }
  0x3b   : > { %605 = vst [vmem:[#allocation2] sm:$0xff] %v604_v4  ;;  %607 = vst [vmem:[#allocation2 + $0x8] sm:$0xff] %v606_v5  ;;  %v610_v7 = vld [vmem:[%s3466_s0 + $0x18] sm:$0xff] }
  0x3c   : > { %609 = vst [vmem:[#allocation2 + $0x10] sm:$0xff] %v608_v6  ;;  %611 = vst [vmem:[#allocation2 + $0x18] sm:$0xff] %v610_v7 }
  0x3d   : > { %619 = vsyncadd [#allocation7], 512 }
  0x3e   : > { %2786 = dma.done.wait [#allocation7], 512 }
  0x3f   : > { %2787 = vsyncadd [#allocation7], 4294966784  ;;  %v2820_v8 = vmov 0.0  }
  0x40   : > { %623 = vst [vmem:[#allocation5] sm:$0xff] %v2820_v8  ;;  %624 = vst [vmem:[#allocation5 + $0x8] sm:$0xff] %v2820_v8 }
  0x41   : > { %625 = vst [vmem:[#allocation5 + $0x10] sm:$0xff] %v2820_v8  ;;  %626 = vst [vmem:[#allocation5 + $0x18] sm:$0xff] %v2820_v8 }
  0x42 PF: > { %p2136_p2 = scmp.ne.s32.totalorder %s2802_s19, 0 }
  0x43   : > { %v2821_v9 = vmov (!%p2136_p2), 0.0  }
  0x44   : > { %629 = sbr.rel (%p2136_p2) target bundleno = 75 (0x4b), region = 141  ;;  %630 = vst [vmem:[#allocation3] sm:$0xff] (!%p2136_p2), %v2821_v9  ;;  %631 = vst [vmem:[#allocation3 + $0x8] sm:$0xff] (!%p2136_p2), %v2821_v9 }
  0x45   : > { %632 = vst [vmem:[#allocation3 + $0x10] sm:$0xff] (!%p2136_p2), %v2821_v9  ;;  %633 = vst [vmem:[#allocation3 + $0x18] sm:$0xff] (!%p2136_p2), %v2821_v9 }
  0x4b PF: > { %v634_v10 = vlaneseq  ;;  %v2822_v11 = vmov 0.0   ;;  %s3498_s25 = scalar_lea.vmem %s3467_s1, %s3517_s30  ;;  %v2823_v23 = vmov 1.0|1.0   ;;  %v724_v34 = vld [vmem:[#allocation2] sm:$0xff]  ;;  %v725_v35 = vld [vmem:[#allocation2 + $0x8] sm:$0xff]  ;;  %v726_v36 = vld [vmem:[#allocation2 + $0x10] sm:$0xff] }
  0x4c   : > { %792 = vmatprep.mubr.f32.mxu0 %v2822_v11  ;;  %v651_v13 = vld [vmem:[%s3498_s25] sm:$0x3]  ;;  %v727_v37 = vld [vmem:[#allocation2 + $0x18] sm:$0xff]  ;;  %v1252_v39 = vld [vmem:[%s2990_s24 + $0x30] sm:$0xff]  ;;  %v2824_v41 = vmov 0   ;;  %p2214_p3 = scmp.ne.s32.totalorder %s2802_s19, 2 }
  0x4d   : > { %v3019_v12 = vshrl.u32 %v634_v10, 7  ;;  %v825_v38 = vld [vmem:[%s2980_s14] sm:$0xff]  ;;  %2685 = vset.pattern.permute.xlu1 %v2824_v41  ;;  %2684 = vset.pattern.permute.xlu0 %v2824_v41  ;;  %v1253_v42 = vld [vmem:[%s2990_s24 + $0x38] sm:$0xff]  ;;  %v1251_v43 = vld [vmem:[%s2990_s24 + $0x28] sm:$0xff]  ;;  %p2215_p4 = scmp.ne.s32.totalorder (!%p2214_p3), %s2806_s20, 1 }
  0x4e   : > { %v1250_v40 = vld [vmem:[%s2990_s24 + $0x20] sm:$0xff]  ;;  %1286 = vperm.xlu1 %2685, %v1252_v39   ;;  %v1405_v44 = vld [vmem:[%s2970_s27 + $0x8] sm:$0xff]  ;;  %v1407_v48 = vld [vmem:[%s2970_s27 + $0x18] sm:$0xff] }
  0x4f   : > { %v636_v14 = vadd.s32 8, %v3019_v12  ;;  %v658_v15 = vsub.s32 1, %v3019_v12  ;;  %v654_v16 = vsub.s32 0, %v3019_v12  ;;  %v637_v17 = vadd.s32 16, %v3019_v12  ;;  %1276 = vperm.xlu0 %2684, %v1250_v40   ;;  %v1404_v45 = vld [vmem:[%s2970_s27] sm:$0xff]  ;;  %v1247_v46 = vld [vmem:[%s2990_s24 + $0x8] sm:$0xff] }
  0x50   : > { %v638_v18 = vadd.s32 24, %v3019_v12  ;;  %v639_v21 = vadd.s32 32, %v3019_v12  ;;  %v640_v22 = vadd.s32 40, %v3019_v12  ;;  %v641_v24 = vadd.s32 48, %v3019_v12  ;;  %v1246_v47 = vld [vmem:[%s2990_s24] sm:$0xff]  ;;  %v1406_v49 = vld [vmem:[%s2970_s27 + $0x10] sm:$0xff] }
  0x51   : > { %v3031_v19 = vrot.slane %v651_v13, %v658_v15  ;;  %v3033_v20 = vrot.slane %v651_v13, %v654_v16  ;;  %v642_v25 = vadd.s32 56, %v3019_v12  ;;  %v643_v26 = vadd.s32 64, %v3019_v12  ;;  %v1249_v50 = vld [vmem:[%s2990_s24 + $0x18] sm:$0xff]  ;;  %v1248_v51 = vld [vmem:[%s2990_s24 + $0x10] sm:$0xff]  ;;  %v1409_v52 = vld [vmem:[%s2970_s27 + $0x28] sm:$0xff] }
  0x52   : > { %v644_v27 = vadd.s32 72, %v3019_v12  ;;  %v645_v28 = vadd.s32 80, %v3019_v12  ;;  %v646_v29 = vadd.s32 88, %v3019_v12  ;;  %v647_v30 = vadd.s32 96, %v3019_v12  ;;  %1291 = vperm.xlu1 %2685, %v1253_v42   ;;  %v1408_v53 = vld [vmem:[%s2970_s27 + $0x20] sm:$0xff]  ;;  %v1411_v54 = vld [vmem:[%s2970_s27 + $0x38] sm:$0xff] }
  0x53   : > { %vm661_vm0 = vcmp.eq.s32.totalorder %v3019_v12, %v3031_v19  ;;  %vm663_vm1 = vcmp.eq.s32.totalorder %v636_v14, %v3031_v19  ;;  %vm660_vm2 = vcmp.eq.s32.totalorder %v3019_v12, %v3033_v20  ;;  %vm662_vm3 = vcmp.eq.s32.totalorder %v636_v14, %v3033_v20  ;;  %1281 = vperm.xlu0 %2684, %v1251_v43   ;;  %v1410_v55 = vld [vmem:[%s2970_s27 + $0x30] sm:$0xff]  ;;  %v1413_v56 = vld [vmem:[%s2970_s27 + $0x48] sm:$0xff]  ;;  %v1412_v57 = vld [vmem:[%s2970_s27 + $0x40] sm:$0xff] }
  0x54   : > { %vm2454_vm4 = vmpackc.low %vm663_vm1, %vm661_vm0  ;;  %vm665_vm5 = vcmp.eq.s32.totalorder %v637_v17, %v3031_v19  ;;  %vm667_vm6 = vcmp.eq.s32.totalorder %v638_v18, %v3031_v19  ;;  %vm664_vm7 = vcmp.eq.s32.totalorder %v637_v17, %v3033_v20  ;;  %vm666_vm8 = vcmp.eq.s32.totalorder %v638_v18, %v3033_v20  ;;  %v1415_v58 = vld [vmem:[%s2970_s27 + $0x58] sm:$0xff]  ;;  %v1414_v59 = vld [vmem:[%s2970_s27 + $0x50] sm:$0xff] }
  0x55   : > { %2455 = vmatprep.subr.msk.bf16.mxu0 %vm2454_vm4, %v2823_v23  ;;  %vm2456_vm9 = vmpackc.low %vm662_vm3, %vm660_vm2  ;;  %vm669_vm10 = vcmp.eq.s32.totalorder %v639_v21, %v3031_v19  ;;  %vm671_vm11 = vcmp.eq.s32.totalorder %v640_v22, %v3031_v19  ;;  %vm668_vm15 = vcmp.eq.s32.totalorder %v639_v21, %v3033_v20  ;;  %vm670_vm0 = vcmp.eq.s32.totalorder %v640_v22, %v3033_v20  ;;  %v1417_v60 = vld [vmem:[%s2970_s27 + $0x68] sm:$0xff]  ;;  %v1416_v61 = vld [vmem:[%s2970_s27 + $0x60] sm:$0xff] }
  0x56   : > { %2457 = vmatpush1.bf16.msk.msra.mxu0 %vm2456_vm9, %v2823_v23  ;;  %vm2458_vm12 = vmpackc.low %vm667_vm6, %vm665_vm5  ;;  %vm673_vm1 = vcmp.eq.s32.totalorder %v641_v24, %v3031_v19  ;;  %vm675_vm2 = vcmp.eq.s32.totalorder %v642_v25, %v3031_v19  ;;  %vm672_vm5 = vcmp.eq.s32.totalorder %v641_v24, %v3033_v20  ;;  %vm674_vm6 = vcmp.eq.s32.totalorder %v642_v25, %v3033_v20  ;;  %v1419_v62 = vld [vmem:[%s2970_s27 + $0x78] sm:$0xff]  ;;  %v1418_v63 = vld [vmem:[%s2970_s27 + $0x70] sm:$0xff] }
  0x57   : > { %2459 = vmatprep.subr.msk.bf16.mxu0 %vm2458_vm12, %v2823_v23  ;;  %vm2460_vm13 = vmpackc.low %vm666_vm8, %vm664_vm7  ;;  %vm677_vm7 = vcmp.eq.s32.totalorder %v643_v26, %v3031_v19  ;;  %vm679_vm8 = vcmp.eq.s32.totalorder %v644_v27, %v3031_v19  ;;  %vm678_vm12 = vcmp.eq.s32.totalorder %v644_v27, %v3033_v20  ;;  %v648_v31 = vadd.s32 104, %v3019_v12  ;;  %1424 = vperm.xlu1 %2685, %v1405_v44   ;;  %v826_v13 = vld [vmem:[%s2980_s14 + $0x8] sm:$0xff]  ;;  %v827_v14 = vld [vmem:[%s2980_s14 + $0x10] sm:$0xff] }
  0x58   : > { %vm2462_vm14 = vmpackc.low %vm671_vm11, %vm669_vm10  ;;  %vm676_vm11 = vcmp.eq.s32.totalorder %v643_v26, %v3033_v20  ;;  %v649_v32 = vadd.s32 112, %v3019_v12  ;;  %v650_v33 = vadd.s32 120, %v3019_v12  ;;  %1421 = vperm.xlu0 %2684, %v1404_v45   ;;  %v1100_v15 = vld [vmem:[%s3002_s16] sm:$0xff]  ;;  %v1101_v16 = vld [vmem:[%s3002_s16 + $0x8] sm:$0xff] }
  0x59   : > { %vm2464_vm3 = vmpackc.low %vm670_vm0, %vm668_vm15  ;;  %v828_v17 = vld [vmem:[%s2980_s14 + $0x18] sm:$0xff]  ;;  %v829_v18 = vld [vmem:[%s2980_s14 + $0x20] sm:$0xff] }
  0x5a   : > { %2461 = vmatpush1.bf16.msk.msra.mxu0 %vm2460_vm13, %v2823_v23  ;;  %vm2466_vm4 = vmpackc.low %vm675_vm2, %vm673_vm1  ;;  %vm681_vm13 = vcmp.eq.s32.totalorder %v645_v28, %v3031_v19  ;;  %vm680_vm1 = vcmp.eq.s32.totalorder %v645_v28, %v3033_v20  ;;  %vm682_vm2 = vcmp.eq.s32.totalorder %v646_v29, %v3033_v20  ;;  %v831_v21 = vld [vmem:[%s2980_s14 + $0x30] sm:$0xff]  ;;  %v832_v22 = vld [vmem:[%s2980_s14 + $0x38] sm:$0xff] }
  0x5b   : > { %2463 = vmatprep.subr.msk.bf16.mxu0 %vm2462_vm14, %v2823_v23  ;;  %vm2468_vm9 = vmpackc.low %vm674_vm6, %vm672_vm5  ;;  %vm683_vm14 = vcmp.eq.s32.totalorder %v646_v29, %v3031_v19  ;;  %1261 = vperm.xlu1 %2685, %v1247_v46   ;;  %v817_v24 = vld [vmem:[%s2975_s21] sm:$0xff]  ;;  %v1102_v25 = vld [vmem:[%s3002_s16 + $0x10] sm:$0xff] }
  0x5c   : > { %vm2470_vm10 = vmpackc.low %vm679_vm8, %vm677_vm7  ;;  %vm684_vm7 = vcmp.eq.s32.totalorder %v647_v30, %v3033_v20  ;;  %vm686_vm8 = vcmp.eq.s32.totalorder %v648_v31, %v3033_v20  ;;  %1256 = vperm.xlu0 %2684, %v1246_v47   ;;  %v1103_v26 = vld [vmem:[%s3002_s16 + $0x18] sm:$0x1]  ;;  %v818_v27 = vld [vmem:[%s2975_s21 + $0x8] sm:$0xff]  ;;  %v3185_v47 = vand.u32 127, %v634_v10 }
  0x5d   : > { %vm2472_vm15 = vmpackc.low %vm678_vm12, %vm676_vm11  ;;  %v819_v28 = vld [vmem:[%s2975_s21 + $0x10] sm:$0xff]  ;;  %v2506_v29 = vpack.c.bf16 %v1103_v26, %v1102_v25  ;;  %v1096_v39 = vld [vmem:[%s2985_s13 + $0x20] sm:$0xff] }
  0x5e   : > { %2465 = vmatpush1.bf16.msk.msra.mxu0 %vm2464_vm3, %v2823_v23  ;;  %vm2474_vm0 = vmpackc.low %vm683_vm14, %vm681_vm13  ;;  %vm685_vm3 = vcmp.eq.s32.totalorder %v647_v30, %v3031_v19  ;;  %vm688_vm13 = vcmp.eq.s32.totalorder %v649_v32, %v3033_v20  ;;  %vm690_vm14 = vcmp.eq.s32.totalorder %v650_v33, %v3033_v20  ;;  %v830_v20 = vld [vmem:[%s2980_s14 + $0x28] sm:$0xff]  ;;  %v820_v30 = vld [vmem:[%s2975_s21 + $0x18] sm:$0xff] }
  0x5f   : > { %2467 = vmatprep.subr.msk.bf16.mxu0 %vm2466_vm4, %v2823_v23  ;;  %vm687_vm4 = vcmp.eq.s32.totalorder %v648_v31, %v3031_v19  ;;  %vm2476_vm5 = vmpackc.low %vm682_vm2, %vm680_vm1  ;;  %1430 = vperm.xlu1 %2685, %v1407_v48   ;;  %vm1129_vm1 = vcmask 1040384   ;;  %vm2825_vm2 = vmmov 1   ;;  %v821_v31 = vld [vmem:[%s2975_s21 + $0x20] sm:$0xff]  ;;  %v1097_v40 = vld [vmem:[%s2985_s13 + $0x28] sm:$0xff] }
  0x60   : > { %vm2478_vm6 = vmpackc.low %vm687_vm4, %vm685_vm3  ;;  %1427 = vperm.xlu0 %2684, %v1406_v49   ;;  %vm1104_vm4 = vcmask 203776   ;;  %v1098_v41 = vld [vmem:[%s2985_s13 + $0x30] sm:$0xff]  ;;  %v1099_v42 = vld [vmem:[%s2985_s13 + $0x38] sm:$0xff] }
  0x61   : > { %vm2480_vm11 = vmpackc.low %vm686_vm8, %vm684_vm7 }
  0x62   : > { %2469 = vmatpush1.bf16.msk.msra.mxu0 %vm2468_vm9, %v2823_v23  ;;  %vm689_vm9 = vcmp.eq.s32.totalorder %v649_v32, %v3031_v19  ;;  %vm2507_vm3 = vmpackc.low %vm1129_vm1, %vm2825_vm2  ;;  %v822_v32 = vld [vmem:[%s2975_s21 + $0x28] sm:$0xff] }
  0x63   : > { %2471 = vmatprep.subr.msk.bf16.mxu0 %vm2470_vm10, %v2823_v23  ;;  %vm691_vm10 = vcmp.eq.s32.totalorder %v650_v33, %v3031_v19  ;;  %1271 = vperm.xlu1 %2685, %v1249_v50   ;;  %v2502_v19 = vpack.c.bf16 %v1101_v16, %v1100_v15  ;;  %v823_v33 = vld [vmem:[%s2975_s21 + $0x30] sm:$0xff] }
  0x64   : > { %vm2482_vm12 = vmpackc.low %vm691_vm10, %vm689_vm9  ;;  %1266 = vperm.xlu0 %2684, %v1248_v51  }
  0x66   : > { %2473 = vmatpush1.bf16.msk.msra.mxu0 %vm2472_vm15, %v2823_v23  ;;  %vm2484_vm15 = vmpackc.low %vm690_vm14, %vm688_vm13 }
  0x67   : > { %2475 = vmatprep.subr.msk.bf16.mxu0 %vm2474_vm0, %v2823_v23  ;;  %vm833_vm0 = vcmask 261120   ;;  %1436 = vperm.xlu1 %2685, %v1409_v52  }
  0x68   : > { %2326 = vmatprep.mubr.msk.f32.mxu1 %vm833_vm0, %v825_v38  ;;  %1433 = vperm.xlu0 %2684, %v1408_v53   ;;  %v1095_v38 = vld [vmem:[%s2985_s13 + $0x18] sm:$0xff] }
  0x6a   : > { %2477 = vmatpush1.bf16.msk.msra.mxu0 %vm2476_vm5, %v2823_v23 }
  0x6b   : > { %2479 = vmatprep.subr.msk.bf16.mxu0 %vm2478_vm6, %v2823_v23  ;;  %1442 = vperm.xlu1 %2685, %v1411_v54  }
  0x6c   : > { %1439 = vperm.xlu0 %2684, %v1410_v55  }
  0x6e   : > { %2481 = vmatpush1.bf16.msk.msra.mxu0 %vm2480_vm11, %v2823_v23 }
  0x6f   : > { %2483 = vmatprep.subr.msk.bf16.mxu0 %vm2482_vm12, %v2823_v23  ;;  %1448 = vperm.xlu1 %2685, %v1413_v56  }
  0x70   : > { %1445 = vperm.xlu0 %2684, %v1412_v57  }
  0x72   : > { %2485 = vmatpush1.bf16.msk.msra.mxu0 %vm2484_vm15, %v2823_v23 }
  0x73   : > { %1454 = vperm.xlu1 %2685, %v1415_v58  }
  0x74   : > { %1451 = vperm.xlu0 %2684, %v1414_v59  }
  0x75   : > { %793 = vmatmul.mubr.f32.vlgmr.msra.gmra.mrb[0].mxu0 %v724_v34  ;;  %v824_v34 = vld [vmem:[%s2975_s21 + $0x38] sm:$0xff] }
  0x76   : > { %798 = vmatprep.mubr.f32.mxu0 %v2822_v11 }
  0x77   : > { %1460 = vperm.xlu1 %2685, %v1417_v60  }
  0x78   : > { %1457 = vperm.xlu0 %2684, %v1416_v61  }
  0x79   : > { %799 = vmatmul.mubr.f32.gmra.mrb[2].mxu0 %v725_v35  ;;  %v1092_v35 = vld [vmem:[%s2985_s13] sm:$0xff] }
  0x7a   : > { %804 = vmatprep.mubr.f32.mxu0 %v2822_v11 }
  0x7b   : > { %1466 = vperm.xlu1 %2685, %v1419_v62  }
  0x7c   : > { %1463 = vperm.xlu0 %2684, %v1418_v63  }
  0x7d   : > { %805 = vmatmul.mubr.f32.gmra.mrb[4].mxu0 %v726_v36  ;;  %v1093_v36 = vld [vmem:[%s2985_s13 + $0x8] sm:$0xff] }
  0x7e   : > { %810 = vmatprep.mubr.f32.mxu0 %v2822_v11 }
  0x81   : > { %811 = vmatmul.mubr.f32.gmra.mrb[6].mxu0 %v727_v37  ;;  %v1094_v37 = vld [vmem:[%s2985_s13 + $0x10] sm:$0xff] }
  0xcd   : > { %v3176_v43 = vpop.permute.xlu1 %1286 }
  0xce   : > { %v3178_v44 = vpop.permute.xlu0 %1276 }
  0xd1   : > { %v3180_v45 = vpop.permute.xlu1 %1291 }
  0xd2   : > { %v3182_v46 = vpop.permute.xlu0 %1281 }
  0xd6   : > { %v1425_v48 = vpop.permute.xlu1 %1424 }
  0xd7   : > { %v1422_v49 = vpop.permute.xlu0 %1421  ;;  %vm1469_vm5 = vcmp.eq.s32.totalorder %v3185_v47, %v1425_v48 }
  0xd8   : > { %vm1468_vm6 = vcmp.eq.s32.totalorder %v3185_v47, %v1422_v49 }
  0xd9   : > { %vm2512_vm7 = vmpackc.low %vm1469_vm5, %vm1468_vm6 }
  0xda   : > { %2513 = vmatprep.subr.msk.bf16.mxu0 %vm2512_vm7, %v2823_v23  ;;  %v1262_v50 = vpop.permute.xlu1 %1261 }
  0xdb   : > { %v3190_v51 = vpop.permute.xlu0 %1256  ;;  %2515 = vmatpush3.bf16.msk.msra.mxu0 %vm2512_vm7, %v2823_v23 }
  0xde   : > { %v1431_v52 = vpop.permute.xlu1 %1430 }
  0xdf   : > { %v1428_v53 = vpop.permute.xlu0 %1427  ;;  %vm1471_vm8 = vcmp.eq.s32.totalorder %v3185_v47, %v1431_v52 }
  0xe0   : > { %vm1470_vm9 = vcmp.eq.s32.totalorder %v3185_v47, %v1428_v53 }
  0xe1   : > { %vm2516_vm10 = vmpackc.low %vm1471_vm8, %vm1470_vm9 }
  0xe2   : > { %2517 = vmatprep.subr.msk.bf16.mxu0 %vm2516_vm10, %v2823_v23  ;;  %v3196_v10 = vpop.permute.xlu1 %1271 }
  0xe3   : > { %v3198_v54 = vpop.permute.xlu0 %1266  ;;  %2519 = vmatpush3.bf16.msk.msra.mxu0 %vm2516_vm10, %v2823_v23 }
  0xe6   : > { %v1437_v55 = vpop.permute.xlu1 %1436 }
  0xe7   : > { %v1434_v56 = vpop.permute.xlu0 %1433  ;;  %vm1473_vm11 = vcmp.eq.s32.totalorder %v3185_v47, %v1437_v55 }
  0xe8   : > { %vm1472_vm12 = vcmp.eq.s32.totalorder %v3185_v47, %v1434_v56 }
  0xe9   : > { %vm2520_vm13 = vmpackc.low %vm1473_vm11, %vm1472_vm12 }
  0xea   : > { %2521 = vmatprep.subr.msk.bf16.mxu0 %vm2520_vm13, %v2823_v23  ;;  %v1443_v57 = vpop.permute.xlu1 %1442 }
  0xeb   : > { %v1440_v58 = vpop.permute.xlu0 %1439  ;;  %2523 = vmatpush3.bf16.msk.msra.mxu0 %vm2520_vm13, %v2823_v23  ;;  %vm1475_vm14 = vcmp.eq.s32.totalorder %v3185_v47, %v1443_v57 }
  0xec   : > { %vm1474_vm15 = vcmp.eq.s32.totalorder %v3185_v47, %v1440_v58 }
  0xee   : > { %v1449_v59 = vpop.permute.xlu1 %1448 }
  0xef   : > { %v1446_v60 = vpop.permute.xlu0 %1445  ;;  %vm1477_vm1 = vcmp.eq.s32.totalorder %v3185_v47, %v1449_v59 }
  0xf0   : > { %vm1476_vm2 = vcmp.eq.s32.totalorder %v3185_v47, %v1446_v60 }
  0xf2   : > { %v1455_v61 = vpop.permute.xlu1 %1454 }
  0xf3   : > { %v1452_v62 = vpop.permute.xlu0 %1451 }
  0xf4   : > { %vm1478_vm5 = vcmp.eq.s32.totalorder %v3185_v47, %v1452_v62 }
  0xf6   : > { %v1461_v63 = vpop.permute.xlu1 %1460 }
  0xf7   : > { %vm1481_vm7 = vcmp.eq.s32.totalorder %v3185_v47, %v1461_v63 }
 0x148   : > { %v794_v0 = vpop.f32.mrb[0].mxu0 }
 0x149   : > { %v796_v1 = vpop.f32.mrb[1].mxu0 }
 0x14c   : > { %v800_v2 = vpop.f32.mrb[2].mxu0 }
 0x14d   : > { %v2494_v3 = vpack.c.bf16 %v800_v2, %v794_v0  ;;  %v802_v4 = vpop.f32.mrb[3].mxu0  ;;  %v1458_v0 = vpop.permute.xlu0 %1457 }
 0x14e   : > { %v2486_v5 = vpack.c.bf16 %v802_v4, %v796_v1  ;;  %vm1480_vm8 = vcmp.eq.s32.totalorder %v3185_v47, %v1458_v0  ;;  %v1467_v1 = vpop.permute.xlu1 %1466 }
 0x14f   : > { %vm2536_vm9 = vmpackc.low %vm1481_vm7, %vm1480_vm8  ;;  %vm1483_vm10 = vcmp.eq.s32.totalorder %v3185_v47, %v1467_v1 }
 0x150   : > { %v806_v6 = vpop.f32.mrb[4].mxu0  ;;  %2487 = vmatprep.subr.bf16.mxu1 %v2486_v5 }
 0x151   : > { %v808_v7 = vpop.f32.mrb[5].mxu0  ;;  %2489 = vmatpush3.bf16.msra.mxu1 %v2486_v5  ;;  %v1464_v2 = vpop.permute.xlu0 %1463 }
 0x152   : > { %vm1482_vm11 = vcmp.eq.s32.totalorder %v3185_v47, %v1464_v2 }
 0x153   : > { %vm2540_vm12 = vmpackc.low %vm1483_vm10, %vm1482_vm11 }
 0x154   : > { %v812_v8 = vpop.f32.mrb[6].mxu0 }
 0x155   : > { %v2498_v9 = vpack.c.bf16 %v812_v8, %v806_v6  ;;  %v814_v11 = vpop.f32.mrb[7].mxu0 }
 0x156   : > { %v2490_v12 = vpack.c.bf16 %v814_v11, %v808_v7 }
 0x158   : > { %2491 = vmatprep.subr.bf16.mxu1 %v2490_v12 }
 0x159   : > { %2493 = vmatpush3.bf16.msra.mxu1 %v2490_v12 }
 0x15a   : > { %2495 = vmatprep.subr.bf16.mxu1 %v2494_v3 }
 0x15c   : > { %2327 = vmatmul.mubr.msk.f32.vlgmr.msra.gmra.mrb[0].mxu1 %vm833_vm0, %v826_v13 }
 0x15d   : > { %2497 = vmatpush3.bf16.msra.mxu1 %v2494_v3  ;;  %2329 = vmatprep.mubr.msk.f32.mxu1 %vm833_vm0, %v827_v14 }
 0x15e   : > { %2499 = vmatprep.subr.bf16.mxu1 %v2498_v9 }
 0x160   : > { %2330 = vmatmul.mubr.msk.f32.gmra.mrb[2].mxu1 %vm833_vm0, %v828_v17 }
 0x161   : > { %2501 = vmatpush3.bf16.msra.mxu1 %v2498_v9  ;;  %2332 = vmatprep.mubr.msk.f32.mxu1 %vm833_vm0, %v829_v18 }
 0x162   : > { %2503 = vmatprep.subr.bf16.mxu1 %v2502_v19 }
 0x164   : > { %2333 = vmatmul.mubr.msk.f32.gmra.mrb[4].mxu1 %vm833_vm0, %v830_v20 }
 0x165   : > { %2335 = vmatprep.mubr.msk.f32.mxu1 %vm833_vm0, %v831_v21 }
 0x168   : > { %2336 = vmatmul.mubr.msk.f32.gmra.mrb[6].mxu1 %vm833_vm0, %v832_v22 }
 0x169   : > { %2346 = vmatprep.mubr.msk.f32.mxu1 %vm833_vm0, %v817_v24 }
 0x16c   : > { %2347 = vmatmul.mubr.msk.f32.vlgmr.msra.gmra.mrb[0].mxu1 %vm833_vm0, %v818_v27 }
 0x16d   : > { %2505 = vmatpush3.bf16.msra.mxu1 %v2502_v19  ;;  %2349 = vmatprep.mubr.msk.f32.mxu1 %vm833_vm0, %v819_v28 }
 0x16e   : > { %2508 = vmatprep.subr.msk.bf16.mxu1 %vm2507_vm3, %v2506_v29 }
 0x170   : > { %2350 = vmatmul.mubr.msk.f32.gmra.mrb[2].mxu1 %vm833_vm0, %v820_v30 }
 0x171   : > { %2352 = vmatprep.mubr.msk.f32.mxu1 %vm833_vm0, %v821_v31  ;;  %2511 = vmatpush3.bf16.msk.msra.mxu1 %vm2507_vm3, %v2506_v29  ;;  %vm2528_vm3 = vmpackc.low %vm1477_vm1, %vm1476_vm2 }
 0x174   : > { %2353 = vmatmul.mubr.msk.f32.gmra.mrb[4].mxu1 %vm833_vm0, %v822_v32 }
 0x175   : > { %2355 = vmatprep.mubr.msk.f32.mxu1 %vm833_vm0, %v823_v33 }
 0x178   : > { %2356 = vmatmul.mubr.msk.f32.gmra.mrb[6].mxu1 %vm833_vm0, %v824_v34  ;;  %vm2524_vm0 = vmpackc.low %vm1475_vm14, %vm1474_vm15 }
 0x179   : > { %2366 = vmatprep.mubr.msk.f32.mxu1 %vm1104_vm4, %v1092_v35  ;;  %2525 = vmatprep.subr.msk.bf16.mxu0 %vm2524_vm0, %v2823_v23 }
 0x17a   : > { %2527 = vmatpush3.bf16.msk.msra.mxu0 %vm2524_vm0, %v2823_v23 }
 0x17b   : > { %2529 = vmatprep.subr.msk.bf16.mxu0 %vm2528_vm3, %v2823_v23 }
 0x17c   : > { %2367 = vmatmul.mubr.msk.f32.vlgmr.msra.gmra.mrb[0].mxu1 %vm1104_vm4, %v1093_v36 }
 0x17d   : > { %2369 = vmatprep.mubr.msk.f32.mxu1 %vm1104_vm4, %v1094_v37 }
 0x17e   : > { %2531 = vmatpush3.bf16.msk.msra.mxu0 %vm2528_vm3, %v2823_v23 }
 0x180   : > { %2370 = vmatmul.mubr.msk.f32.gmra.mrb[2].mxu1 %vm1104_vm4, %v1095_v38 }
 0x181   : > { %2372 = vmatprep.mubr.msk.f32.mxu1 %vm1104_vm4, %v1096_v39 }
 0x184   : > { %2373 = vmatmul.mubr.msk.f32.gmra.mrb[4].mxu1 %vm1104_vm4, %v1097_v40 }
 0x185   : > { %2375 = vmatprep.mubr.msk.f32.mxu1 %vm1104_vm4, %v1098_v41 }
 0x188   : > { %2376 = vmatmul.mubr.msk.f32.gmra.mrb[6].mxu1 %vm1104_vm4, %v1099_v42  ;;  %vm1479_vm4 = vcmp.eq.s32.totalorder %v3185_v47, %v1455_v61 }
 0x189   : > { %vm2532_vm6 = vmpackc.low %vm1479_vm4, %vm1478_vm5  ;;  %vm1601_vm5 = vcmp.lt.s32.totalorder (!%p2214_p3), %v3185_v47, 50 }
 0x18a   : > { %2533 = vmatprep.subr.msk.bf16.mxu0 %vm2532_vm6, %v2823_v23 }
 0x18b   : > { %2535 = vmatpush3.bf16.msk.msra.mxu0 %vm2532_vm6, %v2823_v23 }
 0x18c   : > { %2537 = vmatprep.subr.msk.bf16.mxu0 %vm2536_vm9, %v2823_v23 }
 0x18f   : > { %2539 = vmatpush3.bf16.msk.msra.mxu0 %vm2536_vm9, %v2823_v23 }
 0x190   : > { %2541 = vmatprep.subr.msk.bf16.mxu0 %vm2540_vm12, %v2823_v23 }
 0x193   : > { %2543 = vmatpush3.bf16.msk.msra.mxu0 %vm2540_vm12, %v2823_v23 }
 0x24f   : > { %v2368_v3 = vpop.f32.mrb[0].mxu1 }
 0x250   : > { %v1199_v4 = vpop.f32.mrb[1].mxu1  ;;  %v1295_v12 = vadd.f32 %v2368_v3, %v1262_v50 }
 0x251   : > { %v1294_v18 = vadd.f32 %v3190_v51, %v1199_v4 }
 0x252   : > { %v2195_v21 = vmul.f32 -1.442695, %v1295_v12 }
 0x253   : > { %v2371_v5 = vpop.f32.mrb[2].mxu1  ;;  %v2194_v29 = vmul.f32 -1.442695, %v1294_v18 }
 0x254   : > { %v1209_v6 = vpop.f32.mrb[3].mxu1  ;;  %v1297_v22 = vadd.f32 %v2371_v5, %v3196_v10 }
 0x255   : > { %v1296_v30 = vadd.f32 %v3198_v54, %v1209_v6 }
 0x256   : > { %v2197_v32 = vmul.f32 -1.442695, %v1297_v22 }
 0x257   : > { %v2374_v7 = vpop.f32.mrb[4].mxu1  ;;  %v2196_v35 = vmul.f32 -1.442695, %v1296_v30 }
 0x258   : > { %v3226_v8 = vadd.f32 %v2374_v7, %v3182_v46  ;;  %v1219_v9 = vpop.f32.mrb[5].mxu1 }
 0x259   : > { %v3229_v11 = vadd.f32 %v3178_v44, %v1219_v9 }
 0x25a   : > { %v1339_v13 = vand.u32 2147483647, %v3226_v8  ;;  %v1327_v0 = vmax.f32 %v3226_v8, 0.0  ;;  %vm1331_vm14 = vcmp.ne.f32.partialorder %v3226_v8, %v3226_v8 }
 0x25b   : > { %v1338_v14 = vand.u32 2147483647, %v3229_v11  ;;  %v2377_v15 = vpop.f32.mrb[6].mxu1  ;;  %v1326_v4 = vmax.f32 %v3229_v11, 0.0  ;;  %vm1330_vm1 = vcmp.ne.f32.partialorder %v3229_v11, %v3229_v11 }
 0x25c   : > { %v1343_v16 = vsub.f32 0.0, %v1339_v13  ;;  %v3234_v23 = vadd.f32 %v2377_v15, %v3180_v45  ;;  %v1229_v17 = vpop.f32.mrb[7].mxu1 }
 0x25d   : > { %v1342_v19 = vsub.f32 0.0, %v1338_v14  ;;  %v3238_v20 = vadd.f32 %v3176_v43, %v1229_v17 }
 0x25e   : > { %v1348_v24 = vmul.f32 1.442695, %v1343_v16  ;;  %v1341_v25 = vand.u32 2147483647, %v3234_v23  ;;  %v1329_v18 = vmax.f32 %v3234_v23, 0.0  ;;  %vm1333_vm3 = vcmp.ne.f32.partialorder %v3234_v23, %v3234_v23 }
 0x25f   : > { %v1346_v26 = vmul.f32 1.442695, %v1342_v19  ;;  %v1340_v27 = vand.u32 2147483647, %v3238_v20  ;;  %v1328_v30 = vmax.f32 %v3238_v20, 0.0  ;;  %vm1332_vm4 = vcmp.ne.f32.partialorder %v3238_v20, %v3238_v20 }
 0x260   : > { %2686 = vpow2.f32 %v1348_v24  ;;  %v1345_v28 = vsub.f32 0.0, %v1341_v25 }
 0x261   : > { %v1344_v31 = vsub.f32 0.0, %v1340_v27  ;;  %2688 = vpow2.f32 %v2195_v21 }
 0x262   : > { %v1352_v33 = vmul.f32 1.442695, %v1345_v28  ;;  %2690 = vpow2.f32 %v1346_v26 }
 0x263   : > { %v1350_v34 = vmul.f32 1.442695, %v1344_v31 }
 0x264   : > { %2692 = vpow2.f32 %v1352_v33 }
 0x265   : > { %2694 = vpow2.f32 %v2194_v29 }
 0x266   : > { %2696 = vpow2.f32 %v2197_v32 }
 0x267   : > { %2698 = vpow2.f32 %v1350_v34 }
 0x268   : > { %2700 = vpow2.f32 %v2196_v35 }
 0x26a   : > { %v2687_v36 = vpop.eup %2686 }
 0x26b   : > { %v1363_v37 = vadd.f32 1.0, %v2687_v36  ;;  %v2689_v38 = vpop.eup %2688  ;;  %v1366_v46 = vmul.f32 -0.5, %v2687_v36  ;;  %v1369_v55 = vand.u32 2147483647, %v2687_v36 }
 0x26c   : > { %v2691_v39 = vpop.eup %2690  ;;  %v1315_v43 = vadd.f32 1.0, %v2689_v38 }
 0x26d   : > { %2702 = vlog2.f32 %v1363_v37  ;;  %v1354_v41 = vadd.f32 1.0, %v2691_v39  ;;  %v1357_v53 = vmul.f32 -0.5, %v2691_v39  ;;  %v1367_v10 = vadd.f32 1.0, %v1366_v46 }
 0x26e   : > { %v2693_v40 = vpop.eup %2692  ;;  %v1360_v62 = vand.u32 2147483647, %v2691_v39  ;;  %vm1370_vm13 = vcmp.lt.f32.partialorder %v1369_v55, 0.0004427343 }
 0x26f   : > { %v2695_v42 = vpop.eup %2694  ;;  %v1381_v44 = vadd.f32 1.0, %v2693_v40  ;;  %2704 = vlog2.f32 %v1354_v41  ;;  %v1384_v54 = vmul.f32 -0.5, %v2693_v40  ;;  %v1358_v58 = vadd.f32 1.0, %v1357_v53 }
 0x270   : > { %v2697_v45 = vpop.eup %2696  ;;  %v1314_v49 = vadd.f32 1.0, %v2695_v42  ;;  %v1368_v61 = vmul.f32 %v2687_v36, %v1367_v10  ;;  %v1387_v1 = vand.u32 2147483647, %v2693_v40  ;;  %vm1361_vm15 = vcmp.lt.f32.partialorder %v1360_v62, 0.0004427343 }
 0x271   : > { %v2699_v48 = vpop.eup %2698  ;;  %2706 = vlog2.f32 %v1381_v44  ;;  %v1317_v52 = vadd.f32 1.0, %v2697_v45  ;;  %v1385_v63 = vadd.f32 1.0, %v1384_v54  ;;  %v1359_v9 = vmul.f32 %v2691_v39, %v1358_v58  ;;  %v1501_v39 = vld [vmem:[#allocation3 + $0x8] sm:$0xff]  ;;  %v1502_v45 = vld [vmem:[#allocation3 + $0x10] sm:$0xff] }
 0x272   : > { %v1372_v50 = vadd.f32 1.0, %v2699_v48  ;;  %v2701_v51 = vpop.eup %2700  ;;  %2708 = vrcp.f32 %v1315_v43  ;;  %v1375_v59 = vmul.f32 -0.5, %v2699_v48  ;;  %v1378_v13 = vand.u32 2147483647, %v2699_v48 }
 0x273   : > { %v1316_v56 = vadd.f32 1.0, %v2701_v51  ;;  %v1386_v15 = vmul.f32 %v2693_v40, %v1385_v63  ;;  %vm1388_vm0 = vcmp.lt.f32.partialorder %v1387_v1, 0.0004427343  ;;  %v1500_v40 = vld [vmem:[#allocation3] sm:$0xff]  ;;  %v2826_v53 = vmov (!%p2214_p3), 0.0  }
 0x274   : > { %2710 = vlog2.f32 %v1372_v50  ;;  %v1376_v12 = vadd.f32 1.0, %v1375_v59  ;;  %vm1379_vm2 = vcmp.lt.f32.partialorder %v1378_v13, 0.0004427343  ;;  %v3262_v10 = vsel (!%p2214_p3), %vm1601_vm5, 1.0, %v2826_v53 }
 0x275   : > { %2712 = vrcp.f32 %v1314_v49 }
 0x276   : > { %2714 = vrcp.f32 %v1317_v52  ;;  %v1377_v27 = vmul.f32 %v2699_v48, %v1376_v12  ;;  %v1605_v52 = vld [vmem:[#allocation2 + $0x10] sm:$0xff] (!%p2214_p3) }
 0x277   : > { %v2703_v57 = vpop.eup %2702  ;;  %2716 = vrcp.f32 %v1316_v56  ;;  %v1604_v56 = vld [vmem:[#allocation2 + $0x8] sm:$0xff] (!%p2214_p3) }
 0x278   : > { %v1365_v60 = vmul.f32 0.6931472, %v2703_v57 }
 0x279   : > { %v2705_v2 = vpop.eup %2704 }
 0x27a   : > { %v1371_v3 = vsel %vm1370_vm13, %v1368_v61, %v1365_v60  ;;  %v1356_v7 = vmul.f32 0.6931472, %v2705_v2  ;;  %v1606_v60 = vld [vmem:[#allocation2 + $0x18] sm:$0xff] (!%p2214_p3) }
 0x27b   : > { %v2707_v5 = vpop.eup %2706  ;;  %v1391_v6 = vadd.f32 %v1371_v3, %v1327_v0  ;;  %v2827_v3 = vmov (!%p2214_p3), 0  }
 0x27c   : > { %v1383_v14 = vmul.f32 0.6931472, %v2707_v5  ;;  %v2709_v16 = vpop.eup %2708  ;;  %v1362_v19 = vsel %vm1361_vm15, %v1359_v9, %v1356_v7  ;;  %2719 = vset.pattern.permute.xlu1 (!%p2214_p3), %v2827_v3  ;;  %2718 = vset.pattern.permute.xlu0 (!%p2214_p3), %v2827_v3 }
 0x27d   : > { %v1395_v17 = vsel %vm1331_vm14, %v3226_v8, %v1391_v6  ;;  %v1390_v24 = vadd.f32 %v1362_v19, %v1326_v4 }
 0x27e   : > { %v2711_v21 = vpop.eup %2710  ;;  %v1399_v22 = vmul.f32 %v2709_v16, %v1395_v17  ;;  %v1389_v25 = vsel %vm1388_vm0, %v1386_v15, %v1383_v14 }
 0x27f   : > { %v1374_v26 = vmul.f32 0.6931472, %v2711_v21  ;;  %v1393_v28 = vadd.f32 %v1389_v25, %v1329_v18  ;;  %v2713_v29 = vpop.eup %2712  ;;  %v1394_v31 = vsel %vm1330_vm1, %v3229_v11, %v1390_v24  ;;  %v1668_v24 = vld [vmem:[%s2995_s2 + $0x8] sm:$0xff] (!%p2214_p3)  ;;  %v1669_v25 = vld [vmem:[%s2995_s2 + $0x10] sm:$0xff] (!%p2214_p3) }
 0x280   : > { %v2715_v8 = vpop.eup %2714  ;;  %v1398_v32 = vmul.f32 %v2713_v29, %v1394_v31  ;;  %v1696_v29 = vld [vmem:[%s3000_s5 + $0x8] sm:$0xff] (!%p2214_p3) }
 0x281   : > { %v1380_v33 = vsel %vm1379_vm2, %v1377_v27, %v1374_v26  ;;  %v1397_v34 = vsel %vm1333_vm3, %v3234_v23, %v1393_v28  ;;  %v2717_v37 = vpop.eup %2716  ;;  %v1503_v23 = vld [vmem:[#allocation3 + $0x18] sm:$0xff]  ;;  %v1667_v26 = vld [vmem:[%s2995_s2] sm:$0xff] (!%p2214_p3) }
 0x282   : > { %v1392_v35 = vadd.f32 %v1380_v33, %v1328_v30  ;;  %v1401_v36 = vmul.f32 %v2715_v8, %v1397_v34  ;;  %2410 = vmatprep.mubr.f32.mxu0 %v1398_v32  ;;  %v1670_v27 = vld [vmem:[%s2995_s2 + $0x18] sm:$0xff] (!%p2214_p3)  ;;  %v1695_v28 = vld [vmem:[%s3000_s5] sm:$0xff] (!%p2214_p3)  ;;  %v1697_v30 = vld [vmem:[%s3000_s5 + $0x10] sm:$0xff] (!%p2214_p3) }
 0x283   : > { %2411 = vmatmul.mubr.f32.vlgmr.msra.gmra.mrb[8].mxu0 %v1399_v22 }
 0x284   : > { %v1396_v38 = vsel %vm1332_vm4, %v3238_v20, %v1392_v35  ;;  %v1603_v20 = vld [vmem:[#allocation2] sm:$0xff] (!%p2214_p3)  ;;  %v1698_v35 = vld [vmem:[%s3000_s5 + $0x18] sm:$0xff] (!%p2214_p3) }
 0x285   : > { %v1400_v11 = vmul.f32 %v2717_v37, %v1396_v38 }
 0x287   : > { %2413 = vmatprep.mubr.f32.mxu0 %v1400_v11 }
 0x288   : > { %2414 = vmatmul.mubr.f32.gmra.mrb[10].mxu0 %v1401_v36 }
 0x356   : > { %v2412_v41 = vpop.f32.mrb[8].mxu0 }
 0x357   : > { %v1590_v42 = vadd.f32 %v2412_v41, %v1501_v39  ;;  %v1570_v43 = vpop.f32.mrb[9].mxu0 }
 0x358   : > { %v1589_v44 = vadd.f32 %v1570_v43, %v1500_v40 }
 0x359   : > { %1594 = vst [vmem:[#allocation3 + $0x8] sm:$0xff] %v1590_v42  ;;  %1600 = sbr.rel (%p2214_p3) target bundleno = 1635 (0x663), region = 145 }
 0x35a   : > { %1593 = vst [vmem:[#allocation3] sm:$0xff] %v1589_v44 }
 0x35b   : > { %v2415_v46 = vpop.f32.mrb[10].mxu0 }
 0x35c   : > { %v1592_v48 = vadd.f32 %v2415_v46, %v1503_v23  ;;  %v1580_v49 = vpop.f32.mrb[11].mxu0 }
 0x35d   : > { %v1591_v50 = vadd.f32 %v1580_v49, %v1502_v45 }
 0x35e   : > { %1596 = vst [vmem:[#allocation3 + $0x18] sm:$0xff] %v1592_v48 }
 0x35f   : > { %1595 = vst [vmem:[#allocation3 + $0x10] sm:$0xff] %v1591_v50 }
 0x360   : > { %v1608_v57 = vld [vmem:[#allocation3 + $0x8] sm:$0xff] }
 0x361   : > { %v1607_v51 = vld [vmem:[#allocation3] sm:$0xff]  ;;  %v1612_v59 = vadd.f32 %v1608_v57, %v1604_v56 }
 0x362   : > { %v1611_v54 = vadd.f32 %v1607_v51, %v1603_v20 }
 0x363   : > { %v1616_v1 = vmul.f32 %v1612_v59, %v3262_v10 }
 0x364   : > { %v1615_v62 = vmul.f32 %v1611_v54, %v3262_v10 }
 0x365   : > { %v1610_v61 = vld [vmem:[#allocation3 + $0x18] sm:$0xff] }
 0x366   : > { %v1609_v55 = vld [vmem:[#allocation3 + $0x10] sm:$0xff]  ;;  %v1614_v63 = vadd.f32 %v1610_v61, %v1606_v60  ;;  %1619 = vadd.xlane.f32.xlu0 %v1615_v62 }
 0x367   : > { %v1613_v58 = vadd.f32 %v1609_v55, %v1605_v52 }
 0x368   : > { %v1618_v2 = vmul.f32 %v1614_v63, %v3262_v10 }
 0x369   : > { %v1617_v0 = vmul.f32 %v1613_v58, %v3262_v10 }
 0x36a   : > { %1621 = vadd.xlane.f32.xlu0 %v1616_v1 }
 0x36b   : > { %1623 = vadd.xlane.f32.xlu1 %v1617_v0 }
 0x36f   : > { %1625 = vadd.xlane.f32.xlu1 %v1618_v2 }
 0x3f3   : > { %v1620_v4 = vpop.xlane.xlu0 %1619 }
 0x3f4   : > { %v1627_v5 = vmul.f32 0.02, %v1620_v4 }
 0x3f6   : > { %v1631_v9 = vsub.f32 %v1611_v54, %v1627_v5 }
 0x3f7   : > { %v1622_v13 = vpop.xlane.xlu0 %1621 }
 0x3f8   : > { %v1624_v6 = vpop.xlane.xlu1 %1623  ;;  %v1628_v14 = vmul.f32 0.02, %v1622_v13  ;;  %v1635_v15 = vmul.f32 %v1631_v9, %v3262_v10  ;;  %v1737_v13 = vld [vmem:[%s3469_s3 + $0x10] sm:$0xff] (!%p2215_p4) }
 0x3f9   : > { %v1629_v7 = vmul.f32 0.02, %v1624_v6 }
 0x3fa   : > { %v1632_v17 = vsub.f32 %v1612_v59, %v1628_v14  ;;  %v1639_v18 = vmul.f32 %v1635_v15, %v1635_v15  ;;  %v1735_v14 = vld [vmem:[%s3469_s3] sm:$0xff] (!%p2215_p4) }
 0x3fb   : > { %v1633_v12 = vsub.f32 %v1613_v58, %v1629_v7 }
 0x3fc   : > { %1643 = vadd.xlane.f32.xlu0 %v1639_v18  ;;  %v1636_v21 = vmul.f32 %v1632_v17, %v3262_v10  ;;  %v1626_v31 = vpop.xlane.xlu1 %1625  ;;  %v1740_v17 = vld [vmem:[%s3469_s3 + $0x28] sm:$0xff] (!%p2215_p4)  ;;  %v1739_v18 = vld [vmem:[%s3469_s3 + $0x20] sm:$0xff] (!%p2215_p4) }
 0x3fd   : > { %v1637_v16 = vmul.f32 %v1633_v12, %v3262_v10  ;;  %v1630_v8 = vmul.f32 0.02, %v1626_v31 }
 0x3fe   : > { %v1640_v22 = vmul.f32 %v1636_v21, %v1636_v21 }
 0x3ff   : > { %v1641_v19 = vmul.f32 %v1637_v16, %v1637_v16  ;;  %v1634_v32 = vsub.f32 %v1614_v63, %v1630_v8 }
 0x400   : > { %1645 = vadd.xlane.f32.xlu1 %v1640_v22  ;;  %v1744_v22 = vld [vmem:[%s3469_s3 + $0x48] sm:$0xff] (!%p2215_p4) }
 0x401   : > { %1647 = vadd.xlane.f32.xlu0 %v1641_v19  ;;  %v1638_v33 = vmul.f32 %v1634_v32, %v3262_v10  ;;  %v1742_v19 = vld [vmem:[%s3469_s3 + $0x38] sm:$0xff] (!%p2215_p4) }
 0x403   : > { %v1642_v34 = vmul.f32 %v1638_v33, %v1638_v33 }
 0x411   : > { %1678 = vperm.xlu1 %2719, %v1668_v24   ;;  %v1743_v24 = vld [vmem:[%s3469_s3 + $0x40] sm:$0xff] (!%p2215_p4) }
 0x415   : > { %1683 = vperm.xlu1 %2719, %v1669_v25   ;;  %v1746_v25 = vld [vmem:[%s3469_s3 + $0x58] sm:$0xff] (!%p2215_p4) }
 0x417   : > { %1673 = vperm.xlu0 %2718, %v1667_v26   ;;  %v1745_v26 = vld [vmem:[%s3469_s3 + $0x50] sm:$0xff] (!%p2215_p4) }
 0x419   : > { %1688 = vperm.xlu1 %2719, %v1670_v27   ;;  %v1748_v27 = vld [vmem:[%s3469_s3 + $0x68] sm:$0xff] (!%p2215_p4) }
 0x41d   : > { %1701 = vperm.xlu1 %2719, %v1695_v28   ;;  %v1747_v28 = vld [vmem:[%s3469_s3 + $0x60] sm:$0xff] (!%p2215_p4) }
 0x421   : > { %1706 = vperm.xlu1 %2719, %v1696_v29   ;;  %v1750_v29 = vld [vmem:[%s3469_s3 + $0x78] sm:$0xff] (!%p2215_p4) }
 0x425   : > { %1711 = vperm.xlu1 %2719, %v1697_v30   ;;  %v1749_v30 = vld [vmem:[%s3469_s3 + $0x70] sm:$0xff] (!%p2215_p4) }
 0x449   : > { %1649 = vadd.xlane.f32.xlu1 %v1642_v34  ;;  %v2829_v34 = vmov (!%p2215_p4), 0.0  }
 0x45a   : > { %1716 = vperm.xlu1 %2719, %v1698_v35  }
 0x489   : > { %v1644_v36 = vpop.xlane.xlu0 %1643 }
 0x48a   : > { %v1651_v37 = vmul.f32 0.02, %v1644_v36 }
 0x48c   : > { %v1655_v38 = vadd.f32 1e-05, %v1651_v37 }
 0x48d   : > { %v1646_v11 = vpop.xlane.xlu1 %1645 }
 0x48e   : > { %v1648_v39 = vpop.xlane.xlu0 %1647  ;;  %2720 = vrsqrt.f32 %v1655_v38  ;;  %v1652_v40 = vmul.f32 0.02, %v1646_v11  ;;  %v2830_v11 = vmov (!%p2215_p4), 1.0|1.0  }
 0x48f   : > { %v1653_v41 = vmul.f32 0.02, %v1648_v39 }
 0x490   : > { %v1656_v42 = vadd.f32 1e-05, %v1652_v40 }
 0x491   : > { %v1657_v43 = vadd.f32 1e-05, %v1653_v41  ;;  %v1679_v44 = vpop.permute.xlu1 %1678 }
 0x492   : > { %2722 = vrsqrt.f32 %v1656_v42 }
 0x493   : > { %2724 = vrsqrt.f32 %v1657_v43 }
 0x495   : > { %v1684_v23 = vpop.permute.xlu1 %1683 }
 0x496   : > { %v1674_v46 = vpop.permute.xlu0 %1673 }
 0x498   : > { %v2721_v45 = vpop.eup %2720 }
 0x499   : > { %v1689_v48 = vpop.permute.xlu1 %1688  ;;  %v1663_v49 = vmul.f32 %v2721_v45, %v1635_v15  ;;  %v2828_v15 = vmov (!%p2215_p4), 0  }
 0x49a   : > { %2729 = vset.pattern.permute.xlu1 (!%p2215_p4), %v2828_v15  ;;  %2728 = vset.pattern.permute.xlu0 (!%p2215_p4), %v2828_v15 }
 0x49b   : > { %v1691_v50 = vmul.f32 %v1674_v46, %v1663_v49  ;;  %1758 = vperm.xlu1 (!%p2215_p4), %2729, %v1737_v13   ;;  %1752 = vperm.xlu0 (!%p2215_p4), %2728, %v1735_v14  }
 0x49c   : > { %v2723_v20 = vpop.eup %2722 }
 0x49d   : > { %v2725_v51 = vpop.eup %2724  ;;  %v1664_v52 = vmul.f32 %v2723_v20, %v1636_v21  ;;  %v1702_v53 = vpop.permute.xlu1 %1701  ;;  %v1741_v21 = vld [vmem:[%s3469_s3 + $0x30] sm:$0xff] (!%p2215_p4) }
 0x49e   : > { %v1719_v54 = vadd.f32 %v1702_v53, %v1691_v50  ;;  %v1665_v56 = vmul.f32 %v2725_v51, %v1637_v16  ;;  %v1736_v16 = vld [vmem:[%s3469_s3 + $0x8] sm:$0xff] (!%p2215_p4) }
 0x49f   : > { %v1692_v55 = vmul.f32 %v1679_v44, %v1664_v52  ;;  %1755 = vperm.xlu0 (!%p2215_p4), %2728, %v1736_v16  }
 0x4a0   : > { %v1723_v57 = vmul.f32 %v1719_v54, %v3262_v10  ;;  %v1693_v60 = vmul.f32 %v1684_v23, %v1665_v56 }
 0x4a1   : > { %v1707_v58 = vpop.permute.xlu1 %1706 }
 0x4a2   : > { %1727 = vst [vmem:[#allocation2] sm:$0xff] %v1723_v57  ;;  %v1720_v59 = vadd.f32 %v1707_v58, %v1692_v55  ;;  %2448 = vmatprep.mubr.f32.mxu0 (!%p2215_p4), %v1723_v57 }
 0x4a3   : > { %1764 = vperm.xlu0 (!%p2215_p4), %2728, %v1739_v18  }
 0x4a4   : > { %v3282_v61 = vmul.f32 %v1720_v59, %v3262_v10 }
 0x4a5   : > { %v1712_v62 = vpop.permute.xlu1 %1711 }
 0x4a6   : > { %1728 = vst [vmem:[#allocation2 + $0x8] sm:$0xff] %v3282_v61  ;;  %v1721_v63 = vadd.f32 %v1712_v62, %v1693_v60 }
 0x4a7   : > { %1770 = vperm.xlu0 (!%p2215_p4), %2728, %v1741_v21  }
 0x4a8   : > { %v1725_v0 = vmul.f32 %v1721_v63, %v3262_v10 }
 0x4aa   : > { %1729 = vst [vmem:[#allocation2 + $0x10] sm:$0xff] %v1725_v0  ;;  %2451 = vmatprep.mubr.f32.mxu1 (!%p2215_p4), %v1725_v0 }
 0x4ab   : > { %1776 = vperm.xlu0 (!%p2215_p4), %2728, %v1743_v24  }
 0x4af   : > { %1782 = vperm.xlu0 (!%p2215_p4), %2728, %v1745_v26  }
 0x4b3   : > { %1788 = vperm.xlu0 (!%p2215_p4), %2728, %v1747_v28  }
 0x4b7   : > { %1794 = vperm.xlu0 (!%p2215_p4), %2728, %v1749_v30  }
 0x4d6   : > { %v1650_v1 = vpop.xlane.xlu1 %1649 }
 0x4d7   : > { %v1654_v2 = vmul.f32 0.02, %v1650_v1 }
 0x4d9   : > { %v1658_v3 = vadd.f32 1e-05, %v1654_v2 }
 0x4da   : > { %v1717_v7 = vpop.permute.xlu1 %1716 }
 0x4db   : > { %2726 = vrsqrt.f32 %v1658_v3 }
 0x4e5   : > { %v2727_v4 = vpop.eup %2726 }
 0x4e6   : > { %v1666_v5 = vmul.f32 %v2727_v4, %v1638_v33 }
 0x4e8   : > { %v1694_v6 = vmul.f32 %v1689_v48, %v1666_v5  ;;  %1734 = sbr.rel (%p2215_p4) target bundleno = 1635 (0x663), region = 149 }
 0x4ea   : > { %v1722_v9 = vadd.f32 %v1717_v7, %v1694_v6 }
 0x4ec   : > { %v3287_v12 = vmul.f32 %v1722_v9, %v3262_v10  ;;  %v1738_v10 = vld [vmem:[%s3469_s3 + $0x18] sm:$0xff] (!%p2215_p4) }
 0x4ed   : > { %1761 = vperm.xlu1 (!%p2215_p4), %2729, %v1738_v10  }
 0x4ee   : > { %1730 = vst [vmem:[#allocation2 + $0x18] sm:$0xff] %v3287_v12 }
 0x4f1   : > { %1767 = vperm.xlu1 %2729, %v1740_v17  }
 0x4f5   : > { %1773 = vperm.xlu1 %2729, %v1742_v19  }
 0x4f9   : > { %1779 = vperm.xlu1 %2729, %v1744_v22  }
 0x4fd   : > { %1785 = vperm.xlu1 %2729, %v1746_v25  }
 0x501   : > { %1791 = vperm.xlu1 %2729, %v1748_v27  }
 0x505   : > { %1797 = vperm.xlu1 %2729, %v1750_v29  }
 0x51a   : > { %v1759_v31 = vpop.permute.xlu1 %1758  ;;  %v1753_v8 = vpop.permute.xlu0 %1752 }
 0x51b   : > { %vm1799_vm6 = vcmp.eq.s32.totalorder %v3185_v47, %v1753_v8  ;;  %vm1801_vm7 = vcmp.eq.s32.totalorder %v3185_v47, %v1759_v31 }
 0x51c   : > { %v1815_v35 = vsel %vm1799_vm6, 1.0, %v2829_v34  ;;  %v1817_v38 = vsel %vm1801_vm7, 1.0, %v2829_v34 }
 0x51e   : > { %v1756_v33 = vpop.permute.xlu0 %1755 }
 0x51f   : > { %vm1800_vm8 = vcmp.eq.s32.totalorder %v3185_v47, %v1756_v33 }
 0x520   : > { %v1816_v36 = vsel %vm1800_vm8, 1.0, %v2829_v34  ;;  %vm2544_vm10 = vmpackc.low %vm1800_vm8, %vm1799_vm6 }
 0x521   : > { %v1831_v37 = vadd.f32 %v1816_v36, %v1815_v35  ;;  %2545 = vmatprep.subr.msk.bf16.mxu0 %vm2544_vm10, %v2830_v11  ;;  %2592 = vmatprep.subr.msk.bf16.mxu1 %vm2544_vm10, %v2830_v11 }
 0x522   : > { %v1765_v40 = vpop.permute.xlu0 %1764  ;;  %2547 = vmatpush3.bf16.msk.msra.mxu0 %vm2544_vm10, %v2830_v11  ;;  %2600 = vmatpush3.bf16.msk.msra.mxu1 %vm2544_vm10, %v2830_v11 }
 0x523   : > { %v1832_v42 = vadd.f32 %v1831_v37, %v1817_v38  ;;  %vm1803_vm12 = vcmp.eq.s32.totalorder %v3185_v47, %v1765_v40 }
 0x524   : > { %v1819_v23 = vsel %vm1803_vm12, 1.0, %v2829_v34 }
 0x526   : > { %v1771_v46 = vpop.permute.xlu0 %1770 }
 0x527   : > { %vm1805_vm15 = vcmp.eq.s32.totalorder %v3185_v47, %v1771_v46 }
 0x528   : > { %v1821_v20 = vsel %vm1805_vm15, 1.0, %v2829_v34 }
 0x52a   : > { %v1777_v52 = vpop.permute.xlu0 %1776 }
 0x52b   : > { %vm1807_vm2 = vcmp.eq.s32.totalorder %v3185_v47, %v1777_v52 }
 0x52c   : > { %v1823_v56 = vsel %vm1807_vm2, 1.0, %v2829_v34 }
 0x52e   : > { %v1783_v58 = vpop.permute.xlu0 %1782 }
 0x52f   : > { %vm1809_vm5 = vcmp.eq.s32.totalorder %v3185_v47, %v1783_v58 }
 0x530   : > { %v1825_v63 = vsel %vm1809_vm5, 1.0, %v2829_v34 }
 0x532   : > { %v1789_v1 = vpop.permute.xlu0 %1788 }
 0x533   : > { %vm1811_vm8 = vcmp.eq.s32.totalorder %v3185_v47, %v1789_v1 }
 0x534   : > { %v1827_v5 = vsel %vm1811_vm8, 1.0, %v2829_v34 }
 0x536   : > { %v1795_v7 = vpop.permute.xlu0 %1794 }
 0x56c   : > { %v1762_v32 = vpop.permute.xlu1 %1761 }
 0x56d   : > { %vm1802_vm9 = vcmp.eq.s32.totalorder %v3185_v47, %v1762_v32 }
 0x56e   : > { %vm3348_vm11 = vmpackc.low %vm1802_vm9, %vm1801_vm7  ;;  %v1818_v43 = vsel %vm1802_vm9, 1.0, %v2829_v34 }
 0x56f   : > { %2549 = vmatprep.subr.msk.bf16.mxu0 %vm3348_vm11, %v2830_v11  ;;  %2593 = vmatprep.subr.msk.bf16.mxu1 %vm3348_vm11, %v2830_v11  ;;  %v1833_v44 = vadd.f32 %v1832_v42, %v1818_v43 }
 0x570   : > { %v1768_v39 = vpop.permute.xlu1 %1767  ;;  %2551 = vmatpush3.bf16.msk.msra.mxu0 %vm3348_vm11, %v2830_v11  ;;  %2601 = vmatpush3.bf16.msk.msra.mxu1 %vm3348_vm11, %v2830_v11  ;;  %vm1813_vm11 = vcmp.eq.s32.totalorder %v3185_v47, %v1795_v7 }
 0x571   : > { %vm1804_vm13 = vcmp.eq.s32.totalorder %v3185_v47, %v1768_v39  ;;  %v1834_v48 = vadd.f32 %v1833_v44, %v1819_v23  ;;  %v1829_v15 = vsel %vm1813_vm11, 1.0, %v2829_v34 }
 0x572   : > { %vm2552_vm14 = vmpackc.low %vm1804_vm13, %vm1803_vm12  ;;  %v1820_v49 = vsel %vm1804_vm13, 1.0, %v2829_v34 }
 0x573   : > { %2553 = vmatprep.subr.msk.bf16.mxu0 %vm2552_vm14, %v2830_v11  ;;  %2594 = vmatprep.subr.msk.bf16.mxu1 %vm2552_vm14, %v2830_v11  ;;  %v1835_v50 = vadd.f32 %v1834_v48, %v1820_v49 }
 0x574   : > { %v1774_v45 = vpop.permute.xlu1 %1773  ;;  %2555 = vmatpush3.bf16.msk.msra.mxu0 %vm2552_vm14, %v2830_v11  ;;  %2602 = vmatpush3.bf16.msk.msra.mxu1 %vm2552_vm14, %v2830_v11 }
 0x575   : > { %vm1806_vm0 = vcmp.eq.s32.totalorder %v3185_v47, %v1774_v45  ;;  %v1836_v53 = vadd.f32 %v1835_v50, %v1821_v20 }
 0x576   : > { %vm2556_vm1 = vmpackc.low %vm1806_vm0, %vm1805_vm15  ;;  %v1822_v54 = vsel %vm1806_vm0, 1.0, %v2829_v34 }
 0x577   : > { %2557 = vmatprep.subr.msk.bf16.mxu0 %vm2556_vm1, %v2830_v11  ;;  %2595 = vmatprep.subr.msk.bf16.mxu1 %vm2556_vm1, %v2830_v11  ;;  %v1837_v55 = vadd.f32 %v1836_v53, %v1822_v54 }
 0x578   : > { %v1780_v51 = vpop.permute.xlu1 %1779  ;;  %2559 = vmatpush3.bf16.msk.msra.mxu0 %vm2556_vm1, %v2830_v11  ;;  %2603 = vmatpush3.bf16.msk.msra.mxu1 %vm2556_vm1, %v2830_v11 }
 0x579   : > { %vm1808_vm3 = vcmp.eq.s32.totalorder %v3185_v47, %v1780_v51  ;;  %v1838_v59 = vadd.f32 %v1837_v55, %v1823_v56 }
 0x57a   : > { %vm2560_vm4 = vmpackc.low %vm1808_vm3, %vm1807_vm2  ;;  %v1824_v60 = vsel %vm1808_vm3, 1.0, %v2829_v34 }
 0x57b   : > { %2561 = vmatprep.subr.msk.bf16.mxu0 %vm2560_vm4, %v2830_v11  ;;  %2596 = vmatprep.subr.msk.bf16.mxu1 %vm2560_vm4, %v2830_v11  ;;  %v1839_v62 = vadd.f32 %v1838_v59, %v1824_v60 }
 0x57c   : > { %v1786_v57 = vpop.permute.xlu1 %1785  ;;  %2563 = vmatpush3.bf16.msk.msra.mxu0 %vm2560_vm4, %v2830_v11  ;;  %2604 = vmatpush3.bf16.msk.msra.mxu1 %vm2560_vm4, %v2830_v11 }
 0x57d   : > { %vm1810_vm6 = vcmp.eq.s32.totalorder %v3185_v47, %v1786_v57  ;;  %v1840_v2 = vadd.f32 %v1839_v62, %v1825_v63 }
 0x57e   : > { %vm2564_vm7 = vmpackc.low %vm1810_vm6, %vm1809_vm5  ;;  %v1826_v3 = vsel %vm1810_vm6, 1.0, %v2829_v34 }
 0x57f   : > { %2565 = vmatprep.subr.msk.bf16.mxu0 %vm2564_vm7, %v2830_v11  ;;  %2597 = vmatprep.subr.msk.bf16.mxu1 %vm2564_vm7, %v2830_v11  ;;  %v1841_v4 = vadd.f32 %v1840_v2, %v1826_v3 }
 0x580   : > { %v1792_v0 = vpop.permute.xlu1 %1791  ;;  %2567 = vmatpush3.bf16.msk.msra.mxu0 %vm2564_vm7, %v2830_v11  ;;  %2605 = vmatpush3.bf16.msk.msra.mxu1 %vm2564_vm7, %v2830_v11 }
 0x581   : > { %vm1812_vm9 = vcmp.eq.s32.totalorder %v3185_v47, %v1792_v0  ;;  %v1842_v9 = vadd.f32 %v1841_v4, %v1827_v5 }
 0x582   : > { %vm2568_vm10 = vmpackc.low %vm1812_vm9, %vm1811_vm8  ;;  %v1828_v13 = vsel %vm1812_vm9, 1.0, %v2829_v34 }
 0x583   : > { %2569 = vmatprep.subr.msk.bf16.mxu0 %vm2568_vm10, %v2830_v11  ;;  %2598 = vmatprep.subr.msk.bf16.mxu1 %vm2568_vm10, %v2830_v11  ;;  %v1843_v14 = vadd.f32 %v1842_v9, %v1828_v13 }
 0x584   : > { %v1798_v6 = vpop.permute.xlu1 %1797  ;;  %2571 = vmatpush3.bf16.msk.msra.mxu0 %vm2568_vm10, %v2830_v11  ;;  %2606 = vmatpush3.bf16.msk.msra.mxu1 %vm2568_vm10, %v2830_v11 }
 0x585   : > { %vm1814_vm12 = vcmp.eq.s32.totalorder %v3185_v47, %v1798_v6  ;;  %v1844_v10 = vadd.f32 %v1843_v14, %v1829_v15 }
 0x586   : > { %vm2572_vm13 = vmpackc.low %vm1814_vm12, %vm1813_vm11  ;;  %v1830_v16 = vsel %vm1814_vm12, 1.0, %v2829_v34 }
 0x587   : > { %2573 = vmatprep.subr.msk.bf16.mxu0 %vm2572_vm13, %v2830_v11  ;;  %2599 = vmatprep.subr.msk.bf16.mxu1 %vm2572_vm13, %v2830_v11  ;;  %v1845_v47 = vadd.f32 %v1844_v10, %v1830_v16 }
 0x588   : > { %2575 = vmatpush3.bf16.msk.msra.mxu0 %vm2572_vm13, %v2830_v11  ;;  %2607 = vmatpush3.bf16.msk.msra.mxu1 %vm2572_vm13, %v2830_v11 }
 0x589   : > { %v1846_v17 = vrot.slane %v1845_v47, 4 }
 0x58b   : > { %2449 = vmatmul.mubr.f32.vlgmr.msra.gmra.mrb[0].mxu0 %v3282_v61  ;;  %2452 = vmatmul.mubr.f32.vlgmr.msra.gmra.mrb[0].mxu1 %v3287_v12  ;;  %v1847_v18 = vadd.f32 %v1846_v17, %v1845_v47 }
 0x58d   : > { %v1848_v19 = vrot.slane %v1847_v18, 2 }
 0x58f   : > { %v1849_v21 = vadd.f32 %v1848_v19, %v1847_v18 }
 0x591   : > { %v1850_v22 = vrot.slane %v1849_v21, 1 }
 0x593   : > { %v1851_v24 = vadd.f32 %v1850_v22, %v1849_v21 }
 0x595   : > { %v1937_v25 = vmax.f32 %v1851_v24, 1.0 }
 0x597   : > { %2730 = vrcp.f32 %v1937_v25 }
 0x5a1   : > { %v2731_v26 = vpop.eup %2730 }
 0x65e   : > { %v2450_v27 = vpop.f32.mrb[0].mxu0  ;;  %v2453_v28 = vpop.f32.mrb[0].mxu1 }
 0x65f   : > { %v1940_v29 = vmul.f32 %v2731_v26, %v2450_v27  ;;  %v1942_v30 = vmul.f32 %v2731_v26, %v2453_v28  ;;  %v1918_v31 = vpop.f32.mrb[1].mxu0  ;;  %v1928_v8 = vpop.f32.mrb[1].mxu1 }
 0x660   : > { %v1939_v32 = vmul.f32 %v2731_v26, %v1918_v31  ;;  %v1941_v33 = vmul.f32 %v2731_v26, %v1928_v8 }
 0x661   : > { %1944 = vst [vmem:[#allocation5 + $0x8] sm:$0xff] %v1940_v29  ;;  %1946 = vst [vmem:[#allocation5 + $0x18] sm:$0xff] %v1942_v30 }
 0x662   : > { %1943 = vst [vmem:[#allocation5] sm:$0xff] %v1939_v32  ;;  %1945 = vst [vmem:[#allocation5 + $0x10] sm:$0xff] %v1941_v33 }
 0x663 PF: > { %s3501_s24 = sadd.s32 4294967295, %s2818_s23   ;;  %s2831_s29 = smov [#allocation5]  }
 0x664   : > { %p3419_p5 = scmp.eq.s32.totalorder %s3501_s24, 5  ;;  %s1953_s16 = sshll.u32 %s2831_s29, 4  ;;  %s1954_s16 = int_to_ptr.vmem [resolvable:$true] %s1953_s16 }
 0x665   : > { %s2732_s15 = scalar_lea.vmem %s1954_s16, 512  ;;  %p2739_p9 = scmp.lt.s32.totalorder %s1954_s16, %s1954_s16 }
 0x666   : > { %p2733_p6 = scmp.ne.s32.totalorder %s1954_s16, %s2732_s15  ;;  %p2740_p10 = scmp.lt.s32.totalorder %s2732_s15, %s2732_s15 }
 0x668   : > { %p2734_p7 = pnand %p2733_p6, %p3419_p5  ;;  %p2741_p11 = por %p2740_p10, %p2739_p9 }
 0x66a   : > { %p2735_p8 = pneg %p2734_p7 }
 0x66c   : > { %p2742_p12 = pnand %p2741_p11, %p2735_p8 }
 0x66e   : > { %2745 = shalt.err (!%p2742_p12)
}
 0x66f   : > { %s3503_s28 = sld [smem:[#allocation21_spill]] }
 0x675   : > { %s2746_s4 = scalar_lea.hbm %s3503_s28, 512 }
 0x676   : > { %p2747_p13 = scmp.ne.s32.totalorder %s3503_s28, %s2746_s4  ;;  %p2752_p2 = scmp.lt.u32.totalorder %s2746_s4, %s3503_s28 }
 0x678   : > { %p2748_p0 = pnand %p2747_p13, %p3419_p5 }
 0x67a   : > { %p2749_p1 = pneg %p2748_p0 }
 0x67c   : > { %p2754_p3 = pnand %p2752_p2, %p2749_p1 }
 0x67e   : > { %2757 = shalt.err (!%p2754_p3)
}
 0x67f   : > { %s2832_s25 = smov 128   ;;  %s2833_s2 = smov 8  }
 0x680   : > { %2609 = dma.vmem_to_hbm [thread:$0]  (%p3419_p5), %s1954_s16, 512, %s3503_s28, [#allocation6], %s2832_s25, %s2832_s25, %s2833_s2  }
 0x681   : > { %2789 = dma.done.wait (%p3419_p5), [#allocation6], 512  }
 0x682   : > { %2791 = vsyncadd (%p3419_p5), [#allocation6], 4294966784 }
 0x683 PF: > { %s22_s23 = sadd.s32 1, %s2818_s23   ;;  %s3504_s17 = sld [smem:[#allocation11_spill]] }
 0x684   : > { %p19_p4 = scmp.ge.s32.totalorder %s22_s23, 8   ;;  %s3505_s18 = sld [smem:[#allocation16_spill]] }
 0x685   : > { %s3506_s19 = sld [smem:[#allocation12_spill]]  ;;  %s3507_s20 = sld [smem:[#allocation13_spill]] }
 0x686   : > { %s3508_s21 = sld [smem:[#allocation14_spill]]  ;;  %s3509_s22 = sld [smem:[#allocation15_spill]] }
 0x687   :  { %21 = sbr.rel (!%p19_p4) target bundleno = 10 (0xa), region = 213 }
 0x68e   :  { %1969 = vsyncpa [#allocation6], 1 }
 0x68f   :  { %1971 = vsyncpa [#allocation6 + $0x1], 1 }

</bundles_post_ra>
